<compile_context>
chip_gen: v7x
topology: tpu7x:2x2x1
jax: 0.10.0
libtpu: 0.0.40
codegen_flags: <defaults>
</compile_context>

<pallas_src>
import functools

import numpy as np
import jax
import jax.numpy as jnp
from jax import lax
from jax.experimental import pallas as pl
from jax.experimental.pallas import tpu as pltpu

# Whole-array-in-VMEM block spec (all operands are ~80 KiB total at these shapes).
_VMEM = pl.BlockSpec(memory_space=pltpu.MemorySpace.VMEM)


# ------------------------------ fused kernel ------------------------------- #

def _vat_fused_kernel(x_ref, drand_ref, w_ref, b_ref, loss_ref, *,
                      xi, eps_pert, iter_count, eps_norm):
    """Entire VAT forward; x, d, W, b and all intermediates stay on-chip."""
    x = x_ref[...]          # (N, D) f32
    w = w_ref[...]          # (D, K) f32
    b = b_ref[...]          # (1, K) f32
    n = x.shape[0]

    def softmax_rows(z):
        m = jnp.max(z, axis=-1, keepdims=True)
        e = jnp.exp(z - m)
        # EUP reciprocal keeps the divide off the VALU slot.
        return e * pl.reciprocal(jnp.sum(e, axis=-1, keepdims=True), approx=True)

    def l2_normalize(v):
        # matches _l2_normalize: norm over all non-batch dims (flattened), + eps
        nrm = jnp.sqrt(jnp.sum(v * v, axis=-1, keepdims=True))
        return v * pl.reciprocal(nrm + eps_norm, approx=True)

    # pred = softmax(model(x), dim=1)   (computed under no_grad in torch)
    pred = softmax_rows(jnp.dot(x, w, preferred_element_type=jnp.float32) + b)
    sum_p = jnp.sum(pred, axis=-1, keepdims=True)

    # d = _l2_normalize(rand(x.shape) - 0.5)
    d = l2_normalize(drand_ref[...])

    # torch autograd for the linear model: d.grad = xi/N * (q*sum(p) - p) @ W^T
    # (xi from r = xi*d, 1/N from reduction='batchmean').  The xi/N scale is
    # kept on the gradient so the +eps_norm bias inside l2_normalize matches
    # the reference (torch normalizes the scaled d.grad with the same eps).
    grad_scale = xi / n
    for _ in range(iter_count):
        logits_hat = jnp.dot(x + xi * d, w,
                             preferred_element_type=jnp.float32) + b
        q_hat = softmax_rows(logits_hat)
        g_logits = (q_hat * sum_p - pred) * grad_scale          # dL/dlogits * xi
        # Contract over the class dim directly — no materialized W^T copy.
        grad_d = lax.dot_general(
            g_logits, w,
            dimension_numbers=(((1,), (1,)), ((), ())),
            preferred_element_type=jnp.float32)                 # (N, D)
        d = l2_normalize(grad_d)

    # Faithful to the reference quirk: forward returns get_kl_div(x + d*eps),
    # and get_kl_div(r) evaluates model(x + r)  =>  logits = model(2*x + eps*d).
    logits = jnp.dot(2.0 * x + eps_pert * d, w,
                     preferred_element_type=jnp.float32) + b

    # F.kl_div(log_softmax(logits), pred, reduction='batchmean')
    m = jnp.max(logits, axis=-1, keepdims=True)
    s = logits - m
    logq = s - jnp.log(jnp.sum(jnp.exp(s), axis=-1, keepdims=True))
    plogp = jnp.where(pred > 0, pred * jnp.log(jnp.maximum(pred, 1e-30)), 0.0)
    elem = plogp - pred * logq
    row = jnp.sum(elem, axis=-1, keepdims=True)    # (N, 1)
    tot = jnp.sum(row, axis=0, keepdims=True)      # (1, 1)
    loss_ref[...] = tot / n


# -------------------------------- wrapper ----------------------------------- #

def vat_loss(x, w, b, key, xi=1e-6, eps=1.0, iter_count=1):
    """Mirrors VATLoss(xi, eps, iter_count).forward(model, x) with pred=None
    for the built-in linear model logits = x.view(N, -1) @ W + b."""
    n = x.shape[0]
    d_dim = int(np.prod(x.shape[1:]))
    x_flat = x.reshape(n, d_dim).astype(jnp.float32)
    # d0 = rand(x.shape) - 0.5  (l2-normalized inside the kernel)
    d_rand = jax.random.uniform(key, (n, d_dim), dtype=jnp.float32) - 0.5

    kern = functools.partial(
        _vat_fused_kernel,
        xi=float(xi), eps_pert=float(eps),
        iter_count=int(iter_count), eps_norm=1e-8,
    )
    # Single fused call, no grid: all operands are whole-array VMEM resident.
    # TODO(synk): once D = C*H*W is large (real images), tile D with a grid
    # ("parallel" on N for v7x megacore, "arbitrary" on D with an f32 VMEM
    # accumulator) and budget against v7x 64 MiB / v5e 16 MiB scoped VMEM.
    loss = pl.pallas_call(
        kern,
        out_shape=jax.ShapeDtypeStruct((1, 1), jnp.float32),
        in_specs=[_VMEM] * 4,
        out_specs=_VMEM,
    )(x_flat, d_rand, w, b)
    return loss[0, 0]


# --------------------------------- main -------------------------------------- #

if __name__ == "__main__":
    key = jax.random.PRNGKey(0)
    kx, kd, kw = jax.random.split(key, 3)

    N, C, H, W = 2, 4, 16, 16          # NCHW like PyTorch
    K = 16                             # number of classes for the linear model
    D = C * H * W

    x = jax.random.normal(kx, (N, C, H, W), dtype=jnp.float32)
    w = 0.05 * jax.random.normal(kw, (D, K), dtype=jnp.float32)
    b = jnp.zeros((1, K), dtype=jnp.float32)

    loss = vat_loss(x, w, b, kd, xi=1e-6, eps=1.0, iter_count=1)
    jax.block_until_ready(loss)
    print("KERNEL_OK")
</pallas_src>

<mosaic_0001>
module attributes {stable_mosaic.version = 11 : i64} {
  func.func @_vat_fused_kernel(%arg0: memref<2x1024xf32, #tpu.memory_space<vmem>>, %arg1: memref<2x1024xf32, #tpu.memory_space<vmem>>, %arg2: memref<1024x16xf32, #tpu.memory_space<vmem>>, %arg3: memref<1x16xf32, #tpu.memory_space<vmem>>, %arg4: memref<1x1xf32, #tpu.memory_space<vmem>>) attributes {dimension_semantics = [], scalar_prefetch = 0 : i64, scratch_operands = 0 : i64, tpu.core_type = #tpu.core_type<tc>} {
    %c0 = arith.constant 0 : index
    %c0_0 = arith.constant 0 : index
    %0 = vector.load %arg0[%c0, %c0_0] : memref<2x1024xf32, #tpu.memory_space<vmem>>, vector<2x1024xf32>
    %c0_1 = arith.constant 0 : index
    %c0_2 = arith.constant 0 : index
    %1 = vector.load %arg2[%c0_1, %c0_2] : memref<1024x16xf32, #tpu.memory_space<vmem>>, vector<1024x16xf32>
    %c0_3 = arith.constant 0 : index
    %c0_4 = arith.constant 0 : index
    %2 = vector.load %arg3[%c0_3, %c0_4] : memref<1x16xf32, #tpu.memory_space<vmem>>, vector<1x16xf32>
    %cst = arith.constant dense<0.000000e+00> : vector<2x16xf32>
    %3 = tpu.matmul %0, %1, %cst {dimension_numbers = #tpu.dot_dimension_numbers<[1], [0], [0], [1], [0, 0, 1, 1], [], []>} : vector<2x1024xf32>, vector<1024x16xf32>, vector<2x16xf32> -> vector<2x16xf32>
    %4 = vector.broadcast %2 : vector<1x16xf32> to vector<2x16xf32>
    %5 = arith.addf %3, %4 : vector<2x16xf32>
    %cst_5 = arith.constant dense<0xFF800000> : vector<2xf32>
    %6 = vector.multi_reduction <maximumf>, %5, %cst_5 [1] : vector<2x16xf32> to vector<2xf32>
    %7 = vector.shape_cast %6 : vector<2xf32> to vector<2x1xf32>
    %8 = vector.broadcast %7 : vector<2x1xf32> to vector<2x16xf32>
    %9 = arith.subf %5, %8 : vector<2x16xf32>
    %10 = math.exp %9 : vector<2x16xf32>
    %cst_6 = arith.constant dense<0.000000e+00> : vector<2xf32>
    %11 = vector.multi_reduction <add>, %10, %cst_6 [1] : vector<2x16xf32> to vector<2xf32>
    %12 = vector.shape_cast %11 : vector<2xf32> to vector<2x1xf32>
    %13 = tpu.reciprocal %12 {approx = true} : vector<2x1xf32> -> vector<2x1xf32>
    %14 = vector.broadcast %13 : vector<2x1xf32> to vector<2x16xf32>
    %15 = arith.mulf %10, %14 : vector<2x16xf32>
    %cst_7 = arith.constant dense<0.000000e+00> : vector<2xf32>
    %16 = vector.multi_reduction <add>, %15, %cst_7 [1] : vector<2x16xf32> to vector<2xf32>
    %17 = vector.shape_cast %16 : vector<2xf32> to vector<2x1xf32>
    %c0_8 = arith.constant 0 : index
    %c0_9 = arith.constant 0 : index
    %18 = vector.load %arg1[%c0_8, %c0_9] : memref<2x1024xf32, #tpu.memory_space<vmem>>, vector<2x1024xf32>
    %19 = arith.mulf %18, %18 : vector<2x1024xf32>
    %cst_10 = arith.constant dense<0.000000e+00> : vector<2xf32>
    %20 = vector.multi_reduction <add>, %19, %cst_10 [1] : vector<2x1024xf32> to vector<2xf32>
    %21 = vector.shape_cast %20 : vector<2xf32> to vector<2x1xf32>
    %22 = math.sqrt %21 : vector<2x1xf32>
    %cst_11 = arith.constant 9.99999993E-9 : f32
    %23 = vector.broadcast %cst_11 : f32 to vector<2x1xf32>
    %24 = arith.addf %22, %23 : vector<2x1xf32>
    %25 = tpu.reciprocal %24 {approx = true} : vector<2x1xf32> -> vector<2x1xf32>
    %26 = vector.broadcast %25 : vector<2x1xf32> to vector<2x1024xf32>
    %27 = arith.mulf %18, %26 : vector<2x1024xf32>
    %cst_12 = arith.constant 9.99999997E-7 : f32
    %28 = vector.broadcast %cst_12 : f32 to vector<2x1024xf32>
    %29 = arith.mulf %28, %27 : vector<2x1024xf32>
    %30 = arith.addf %0, %29 : vector<2x1024xf32>
    %cst_13 = arith.constant dense<0.000000e+00> : vector<2x16xf32>
    %31 = tpu.matmul %30, %1, %cst_13 {dimension_numbers = #tpu.dot_dimension_numbers<[1], [0], [0], [1], [0, 0, 1, 1], [], []>} : vector<2x1024xf32>, vector<1024x16xf32>, vector<2x16xf32> -> vector<2x16xf32>
    %32 = vector.broadcast %2 : vector<1x16xf32> to vector<2x16xf32>
    %33 = arith.addf %31, %32 : vector<2x16xf32>
    %cst_14 = arith.constant dense<0xFF800000> : vector<2xf32>
    %34 = vector.multi_reduction <maximumf>, %33, %cst_14 [1] : vector<2x16xf32> to vector<2xf32>
    %35 = vector.shape_cast %34 : vector<2xf32> to vector<2x1xf32>
    %36 = vector.broadcast %35 : vector<2x1xf32> to vector<2x16xf32>
    %37 = arith.subf %33, %36 : vector<2x16xf32>
    %38 = math.exp %37 : vector<2x16xf32>
    %cst_15 = arith.constant dense<0.000000e+00> : vector<2xf32>
    %39 = vector.multi_reduction <add>, %38, %cst_15 [1] : vector<2x16xf32> to vector<2xf32>
    %40 = vector.shape_cast %39 : vector<2xf32> to vector<2x1xf32>
    %41 = tpu.reciprocal %40 {approx = true} : vector<2x1xf32> -> vector<2x1xf32>
    %42 = vector.broadcast %41 : vector<2x1xf32> to vector<2x16xf32>
    %43 = arith.mulf %38, %42 : vector<2x16xf32>
    %44 = vector.broadcast %17 : vector<2x1xf32> to vector<2x16xf32>
    %45 = arith.mulf %43, %44 : vector<2x16xf32>
    %46 = arith.subf %45, %15 : vector<2x16xf32>
    %cst_16 = arith.constant 5.000000e-07 : f32
    %47 = vector.broadcast %cst_16 : f32 to vector<2x16xf32>
    %48 = arith.mulf %46, %47 : vector<2x16xf32>
    %cst_17 = arith.constant dense<0.000000e+00> : vector<2x1024xf32>
    %49 = tpu.matmul %48, %1, %cst_17 {dimension_numbers = #tpu.dot_dimension_numbers<[1], [1], [0], [0], [0, 0, 1, 0], [], []>} : vector<2x16xf32>, vector<1024x16xf32>, vector<2x1024xf32> -> vector<2x1024xf32>
    %50 = arith.mulf %49, %49 : vector<2x1024xf32>
    %cst_18 = arith.constant dense<0.000000e+00> : vector<2xf32>
    %51 = vector.multi_reduction <add>, %50, %cst_18 [1] : vector<2x1024xf32> to vector<2xf32>
    %52 = vector.shape_cast %51 : vector<2xf32> to vector<2x1xf32>
    %53 = math.sqrt %52 : vector<2x1xf32>
    %cst_19 = arith.constant 9.99999993E-9 : f32
    %54 = vector.broadcast %cst_19 : f32 to vector<2x1xf32>
    %55 = arith.addf %53, %54 : vector<2x1xf32>
    %56 = tpu.reciprocal %55 {approx = true} : vector<2x1xf32> -> vector<2x1xf32>
    %57 = vector.broadcast %56 : vector<2x1xf32> to vector<2x1024xf32>
    %58 = arith.mulf %49, %57 : vector<2x1024xf32>
    %cst_20 = arith.constant 2.000000e+00 : f32
    %59 = vector.broadcast %cst_20 : f32 to vector<2x1024xf32>
    %60 = arith.mulf %59, %0 : vector<2x1024xf32>
    %cst_21 = arith.constant 1.000000e+00 : f32
    %61 = vector.broadcast %cst_21 : f32 to vector<2x1024xf32>
    %62 = arith.mulf %61, %58 : vector<2x1024xf32>
    %63 = arith.addf %60, %62 : vector<2x1024xf32>
    %cst_22 = arith.constant dense<0.000000e+00> : vector<2x16xf32>
    %64 = tpu.matmul %63, %1, %cst_22 {dimension_numbers = #tpu.dot_dimension_numbers<[1], [0], [0], [1], [0, 0, 1, 1], [], []>} : vector<2x1024xf32>, vector<1024x16xf32>, vector<2x16xf32> -> vector<2x16xf32>
    %65 = vector.broadcast %2 : vector<1x16xf32> to vector<2x16xf32>
    %66 = arith.addf %64, %65 : vector<2x16xf32>
    %cst_23 = arith.constant dense<0xFF800000> : vector<2xf32>
    %67 = vector.multi_reduction <maximumf>, %66, %cst_23 [1] : vector<2x16xf32> to vector<2xf32>
    %68 = vector.shape_cast %67 : vector<2xf32> to vector<2x1xf32>
    %69 = vector.broadcast %68 : vector<2x1xf32> to vector<2x16xf32>
    %70 = arith.subf %66, %69 : vector<2x16xf32>
    %71 = math.exp %70 : vector<2x16xf32>
    %cst_24 = arith.constant dense<0.000000e+00> : vector<2xf32>
    %72 = vector.multi_reduction <add>, %71, %cst_24 [1] : vector<2x16xf32> to vector<2xf32>
    %73 = vector.shape_cast %72 : vector<2xf32> to vector<2x1xf32>
    %74 = math.log %73 : vector<2x1xf32>
    %75 = vector.broadcast %74 : vector<2x1xf32> to vector<2x16xf32>
    %76 = arith.subf %70, %75 : vector<2x16xf32>
    %cst_25 = arith.constant 0.000000e+00 : f32
    %77 = vector.broadcast %cst_25 : f32 to vector<2x16xf32>
    %78 = arith.cmpf ogt, %15, %77 : vector<2x16xf32>
    %cst_26 = arith.constant 1.000000e-30 : f32
    %79 = vector.broadcast %cst_26 : f32 to vector<2x16xf32>
    %80 = arith.maximumf %15, %79 : vector<2x16xf32>
    %81 = math.log %80 : vector<2x16xf32>
    %82 = arith.mulf %15, %81 : vector<2x16xf32>
    %cst_27 = arith.constant 0.000000e+00 : f32
    %83 = vector.broadcast %cst_27 : f32 to vector<2x16xf32>
    %84 = arith.select %78, %82, %83 : vector<2x16xi1>, vector<2x16xf32>
    %85 = arith.mulf %15, %76 : vector<2x16xf32>
    %86 = arith.subf %84, %85 : vector<2x16xf32>
    %cst_28 = arith.constant dense<0.000000e+00> : vector<2xf32>
    %87 = vector.multi_reduction <add>, %86, %cst_28 [1] : vector<2x16xf32> to vector<2xf32>
    %88 = vector.shape_cast %87 : vector<2xf32> to vector<2x1xf32>
    %cst_29 = arith.constant dense<0.000000e+00> : vector<1xf32>
    %89 = vector.multi_reduction <add>, %88, %cst_29 [0] : vector<2x1xf32> to vector<1xf32>
    %90 = vector.shape_cast %89 : vector<1xf32> to vector<1x1xf32>
    %cst_30 = arith.constant 2.000000e+00 : f32
    %91 = vector.broadcast %cst_30 : f32 to vector<1x1xf32>
    %92 = arith.divf %90, %91 : vector<1x1xf32>
    %c0_31 = arith.constant 0 : index
    %c0_32 = arith.constant 0 : index
    %93 = vector.load %arg4[%c0_31, %c0_32] : memref<1x1xf32, #tpu.memory_space<vmem>>, vector<1x1xf32>
    tpu.vector_store %arg4[%c0_31, %c0_32], %92 {strides = array<i32>} : memref<1x1xf32, #tpu.memory_space<vmem>>, vector<1x1xf32>,
    return
  }
}

</mosaic_0001>

<bundles_post_ra>
// kernel: tpu_custom_call.1
= control target key start
LH: loop header
LB: loop body
LE: loop exit
PB: predicated region body
PF: predicated region fallthrough
CT: control target
= control target key end

     0   :  { %v3373_v30 = vmov 1983009808   ;;  %v161_v32 = vlaneseq  ;;  %vm542_vm0 = vcmask 1041408   ;;  %s4433_s0 = inlined_call_operand.vmem [shape: f32[2,1024], index: 0, kind: input, shape index: {}]   ;;  %s4434_s1 = inlined_call_operand.vmem [shape: f32[2,1024], index: 1, kind: input, shape index: {}]   ;;  %s4435_s2 = inlined_call_operand.vmem [shape: f32[1024,16], index: 2, kind: input, shape index: {}]   ;;  %s4436_s3 = inlined_call_operand.vmem [shape: f32[1,16], index: 3, kind: input, shape index: {}]   ;;  %s4437_s4 = inlined_call_operand.hbm [shape: f32[1,1], index: 4, kind: output, shape index: {}]  }
   0x1   :  { %v36_v0 = vld [vmem:[%s4435_s2 + $0x80] sm:$0xff]  ;;  %v37_v1 = vld [vmem:[%s4435_s2 + $0x88] sm:$0xff]  ;;  %v38_v11 = vld [vmem:[%s4435_s2 + $0x90] sm:$0xff]  ;;  %v159_v31 = vunpack.c.l.s4 %v3373_v30 }
   0x2   :  { %v20_v2 = vld [vmem:[%s4435_s2] sm:$0xff]  ;;  %v3410_v3 = vpack.c.bf16 %v37_v1, %v36_v0  ;;  %v21_v4 = vld [vmem:[%s4435_s2 + $0x8] sm:$0xff]  ;;  %v39_v13 = vld [vmem:[%s4435_s2 + $0x98] sm:$0xff]  ;;  %v3538_v51 = vshrl.u32 %v161_v32, 7 }
   0x3   :  { %v68_v5 = vld [vmem:[%s4435_s2 + $0x180] sm:$0xff]  ;;  %v69_v6 = vld [vmem:[%s4435_s2 + $0x188] sm:$0xff]  ;;  %v3421_v7 = vpack.c.bf16 %v21_v4, %v20_v2  ;;  %v22_v14 = vld [vmem:[%s4435_s2 + $0x10] sm:$0xff]  ;;  %v3448_v16 = vpack.c.bf16 %v39_v13, %v38_v11  ;;  %v160_v50 = vunpack.c.0.s8 %v159_v31 }
   0x4   :  { %v3423_v8 = vpack.c.bf16 %v69_v6, %v68_v5  ;;  %v52_v9 = vld [vmem:[%s4435_s2 + $0x100] sm:$0xff]  ;;  %v53_v10 = vld [vmem:[%s4435_s2 + $0x108] sm:$0xff]  ;;  %2746 = vmatprep.subr.bf16.mxu0 %v3410_v3  ;;  %v23_v15 = vld [vmem:[%s4435_s2 + $0x18] sm:$0xff] }
   0x5   :  { %v3435_v12 = vpack.c.bf16 %v53_v10, %v52_v9  ;;  %2748 = vmatpush3.bf16.msra.mxu0 %v3421_v7  ;;  %v3450_v17 = vpack.c.bf16 %v23_v15, %v22_v14  ;;  %v70_v18 = vld [vmem:[%s4435_s2 + $0x190] sm:$0xff]  ;;  %v71_v19 = vld [vmem:[%s4435_s2 + $0x198] sm:$0xff]  ;;  %v40_v23 = vld [vmem:[%s4435_s2 + $0xa0] sm:$0xff]  ;;  %v3583_v2 = vsub.s32 %v160_v50, %v3538_v51 }
   0x6   :  { %2778 = vmatprep.subr.bf16.mxu1 %v3423_v8  ;;  %v54_v20 = vld [vmem:[%s4435_s2 + $0x110] sm:$0xff]  ;;  %v3462_v21 = vpack.c.bf16 %v71_v19, %v70_v18  ;;  %v55_v22 = vld [vmem:[%s4435_s2 + $0x118] sm:$0xff]  ;;  %v41_v24 = vld [vmem:[%s4435_s2 + $0xa8] sm:$0xff]  ;;  %2750 = vmatprep.subr.bf16.mxu0 %v3448_v16 }
   0x7   :  { %2780 = vmatpush3.bf16.msra.mxu1 %v3435_v12  ;;  %v3474_v25 = vpack.c.bf16 %v55_v22, %v54_v20  ;;  %v3476_v26 = vpack.c.bf16 %v41_v24, %v40_v23  ;;  %v24_v27 = vld [vmem:[%s4435_s2 + $0x20] sm:$0xff]  ;;  %v25_v28 = vld [vmem:[%s4435_s2 + $0x28] sm:$0xff]  ;;  %v42_v38 = vld [vmem:[%s4435_s2 + $0xb0] sm:$0xff]  ;;  %4510 = vst [vmem:[#allocation5_spill] sm:$0xff] %v3583_v2 }
   0x8   :  { %v72_v29 = vld [vmem:[%s4435_s2 + $0x1a0] sm:$0xff]  ;;  %2782 = vmatprep.subr.bf16.mxu1 %v3462_v21  ;;  %v73_v33 = vld [vmem:[%s4435_s2 + $0x1a8] sm:$0xff]  ;;  %v3498_v36 = vpack.c.bf16 %v25_v28, %v24_v27  ;;  %v43_v39 = vld [vmem:[%s4435_s2 + $0xb8] sm:$0xff] }
   0x9   :  { %v56_v34 = vld [vmem:[%s4435_s2 + $0x120] sm:$0xff]  ;;  %v57_v35 = vld [vmem:[%s4435_s2 + $0x128] sm:$0xff]  ;;  %2752 = vmatpush3.bf16.msra.mxu0 %v3450_v17  ;;  %v3500_v37 = vpack.c.bf16 %v73_v33, %v72_v29  ;;  %v26_v40 = vld [vmem:[%s4435_s2 + $0x30] sm:$0xff]  ;;  %v3515_v42 = vpack.c.bf16 %v43_v39, %v42_v38 }
   0xa   :  { %2754 = vmatprep.subr.bf16.mxu0 %v3476_v26  ;;  %v3513_v41 = vpack.c.bf16 %v57_v35, %v56_v34  ;;  %v27_v43 = vld [vmem:[%s4435_s2 + $0x38] sm:$0xff]  ;;  %v74_v44 = vld [vmem:[%s4435_s2 + $0x1b0] sm:$0xff]  ;;  %v44_v49 = vld [vmem:[%s4435_s2 + $0xc0] sm:$0xff] }
   0xb   :  { %2784 = vmatpush3.bf16.msra.mxu1 %v3474_v25  ;;  %v75_v45 = vld [vmem:[%s4435_s2 + $0x1b8] sm:$0xff]  ;;  %v58_v47 = vld [vmem:[%s4435_s2 + $0x130] sm:$0xff]  ;;  %v45_v52 = vld [vmem:[%s4435_s2 + $0xc8] sm:$0xff]  ;;  %v3544_v53 = vpack.c.bf16 %v27_v43, %v26_v40 }
   0xc   :  { %2786 = vmatprep.subr.bf16.mxu1 %v3500_v37  ;;  %v3527_v46 = vpack.c.bf16 %v75_v45, %v74_v44  ;;  %v59_v48 = vld [vmem:[%s4435_s2 + $0x138] sm:$0xff]  ;;  %v28_v54 = vld [vmem:[%s4435_s2 + $0x40] sm:$0xff]  ;;  %v77_v56 = vld [vmem:[%s4435_s2 + $0x1c8] sm:$0xff]  ;;  %v3559_v58 = vpack.c.bf16 %v45_v52, %v44_v49 }
   0xd   :  { %2756 = vmatpush3.bf16.msra.mxu0 %v3498_v36  ;;  %v76_v55 = vld [vmem:[%s4435_s2 + $0x1c0] sm:$0xff]  ;;  %v3557_v57 = vpack.c.bf16 %v59_v48, %v58_v47  ;;  %v29_v59 = vld [vmem:[%s4435_s2 + $0x48] sm:$0xff]  ;;  %v46_v63 = vld [vmem:[%s4435_s2 + $0xd0] sm:$0xff] }
   0xe   :  { %2758 = vmatprep.subr.bf16.mxu0 %v3515_v42  ;;  %v60_v60 = vld [vmem:[%s4435_s2 + $0x140] sm:$0xff]  ;;  %v61_v61 = vld [vmem:[%s4435_s2 + $0x148] sm:$0xff]  ;;  %v3571_v62 = vpack.c.bf16 %v77_v56, %v76_v55  ;;  %v47_v0 = vld [vmem:[%s4435_s2 + $0xd8] sm:$0xff]  ;;  %v3599_v9 = vpack.c.bf16 %v29_v59, %v28_v54 }
   0xf   :  { %2788 = vmatpush3.bf16.msra.mxu1 %v3513_v41  ;;  %v78_v1 = vld [vmem:[%s4435_s2 + $0x1d0] sm:$0xff]  ;;  %v79_v4 = vld [vmem:[%s4435_s2 + $0x1d8] sm:$0xff]  ;;  %v3591_v5 = vld [vmem:[%s4434_s1] sm:$0xff]  ;;  %v3613_v15 = vpack.c.bf16 %v61_v61, %v60_v60  ;;  %v3615_v18 = vpack.c.bf16 %v47_v0, %v46_v63 }
  0x10   :  { %2790 = vmatprep.subr.bf16.mxu1 %v3527_v46  ;;  %v3596_v6 = vld [vmem:[%s4434_s1 + $0x8] sm:$0xff]  ;;  %v30_v10 = vld [vmem:[%s4435_s2 + $0x50] sm:$0xff]  ;;  %v31_v11 = vld [vmem:[%s4435_s2 + $0x58] sm:$0xff]  ;;  %v496_v13 = vmul.f32 %v3591_v5, %v3591_v5  ;;  %v3621_v20 = vpack.c.bf16 %v79_v4, %v78_v1 }
  0x11   :  { %2760 = vmatpush3.bf16.msra.mxu0 %v3544_v53  ;;  %v497_v14 = vmul.f32 %v3596_v6, %v3596_v6  ;;  %v62_v19 = vld [vmem:[%s4435_s2 + $0x150] sm:$0xff]  ;;  %v63_v24 = vld [vmem:[%s4435_s2 + $0x158] sm:$0xff]  ;;  %v48_v27 = vld [vmem:[%s4435_s2 + $0xe0] sm:$0xff]  ;;  %v3633_v29 = vpack.c.bf16 %v31_v11, %v30_v10 }
  0x12   :  { %2762 = vmatprep.subr.bf16.mxu0 %v3559_v58  ;;  %v500_v22 = vcombine.high %v496_v13, %v496_v13  ;;  %v507_v23 = vrot.slane %v496_v13, %v3583_v2  ;;  %v49_v28 = vld [vmem:[%s4435_s2 + $0xe8] sm:$0xff]  ;;  %v80_v30 = vld [vmem:[%s4435_s2 + $0x1e0] sm:$0xff]  ;;  %v3653_v43 = vpack.c.bf16 %v63_v24, %v62_v19  ;;  %v50_v54 = vld [vmem:[%s4435_s2 + $0xf0] sm:$0xff] }
  0x13   :  { %2792 = vmatpush3.bf16.msra.mxu1 %v3557_v57  ;;  %v81_v31 = vld [vmem:[%s4435_s2 + $0x1e8] sm:$0xff]  ;;  %v517_v34 = vcombine.high %v497_v14, %v497_v14  ;;  %v524_v35 = vrot.slane %v497_v14, %v3583_v2  ;;  %v32_v38 = vld [vmem:[%s4435_s2 + $0x60] sm:$0xff]  ;;  %v3655_v44 = vpack.c.bf16 %v49_v28, %v48_v27  ;;  %v51_v55 = vld [vmem:[%s4435_s2 + $0xf8] sm:$0xff] }
  0x14   :  { %2794 = vmatprep.subr.bf16.mxu1 %v3571_v62  ;;  %v514_v32 = vrot.slane %v500_v22, %v3583_v2  ;;  %v515_v33 = vcombine.high %v507_v23, %v507_v23  ;;  %v33_v39 = vld [vmem:[%s4435_s2 + $0x68] sm:$0xff]  ;;  %v543_v40 = vsel %vm542_vm0, %v507_v23, 0.0  ;;  %v64_v45 = vld [vmem:[%s4435_s2 + $0x160] sm:$0xff]  ;;  %v3666_v52 = vpack.c.bf16 %v81_v31, %v80_v30  ;;  %v82_v61 = vld [vmem:[%s4435_s2 + $0x1f0] sm:$0xff] }
  0x15   :  { %2764 = vmatpush3.bf16.msra.mxu0 %v3599_v9  ;;  %v65_v47 = vld [vmem:[%s4435_s2 + $0x168] sm:$0xff]  ;;  %v3677_v56 = vld [vmem:[%s4433_s0] sm:$0xff]  ;;  %v3679_v60 = vpack.c.bf16 %v33_v39, %v32_v38  ;;  %v83_v63 = vld [vmem:[%s4435_s2 + $0x1f8] sm:$0xff]  ;;  %v531_v0 = vrot.slane %v517_v34, %v3583_v2  ;;  %v532_v1 = vcombine.high %v524_v35, %v524_v35  ;;  %v3694_v13 = vpack.c.bf16 %v51_v55, %v50_v54 }
  0x16   :  { %2766 = vmatprep.subr.bf16.mxu0 %v3615_v18  ;;  %v516_v48 = vcombine.high %v514_v32, %v514_v32  ;;  %v544_v49 = vsel %vm542_vm0, %v515_v33, 0.0  ;;  %v546_v50 = vsel %vm542_vm0, %v514_v32, 0.0  ;;  %v3690_v10 = vpack.c.bf16 %v65_v47, %v64_v45  ;;  %v34_v14 = vld [vmem:[%s4435_s2 + $0x70] sm:$0xff]  ;;  %v35_v19 = vld [vmem:[%s4435_s2 + $0x78] sm:$0xff]  ;;  %v100_v30 = vld [vmem:[%s4435_s2 + $0x280] sm:$0xff] }
  0x17   :  { %2796 = vmatpush3.bf16.msra.mxu1 %v3613_v15  ;;  %v545_v59 = vadd.f32 %v544_v49, %v543_v40  ;;  %4511 = vst [vmem:[#allocation6_spill] sm:$0xff] %v3679_v60  ;;  %4513 = vst [vmem:[#allocation8_spill] sm:$0xff] %v3694_v13  ;;  %v66_v22 = vld [vmem:[%s4435_s2 + $0x170] sm:$0xff]  ;;  %v164_v23 = vrot.slane %v3677_v56, %v3583_v2  ;;  %v550_v24 = vsel %vm542_vm0, %v524_v35, 0.0  ;;  %v67_v28 = vld [vmem:[%s4435_s2 + $0x178] sm:$0xff]  ;;  %v552_v40 = vsel %vm542_vm0, %v532_v1, 0.0 }
  0x18   :  { %2798 = vmatprep.subr.bf16.mxu1 %v3621_v20  ;;  %v548_v4 = vsel %vm542_vm0, %v516_v48, 0.0  ;;  %4512 = vst [vmem:[#allocation7_spill] sm:$0xff] %v3690_v10  ;;  %v3709_v27 = vpack.c.bf16 %v83_v63, %v82_v61  ;;  %v101_v31 = vld [vmem:[%s4435_s2 + $0x288] sm:$0xff]  ;;  %v157_v32 = vcombine.high %v3677_v56, %v3677_v56  ;;  %v132_v35 = vld [vmem:[%s4435_s2 + $0x380] sm:$0xff]  ;;  %v533_v39 = vcombine.high %v531_v0, %v531_v0 }
  0x19   :  { %2768 = vmatpush3.bf16.msra.mxu0 %v3633_v29  ;;  %v547_v11 = vadd.f32 %v546_v50, %v545_v59  ;;  %v172_v34 = vcombine.high %v164_v23, %v164_v23  ;;  %v133_v38 = vld [vmem:[%s4435_s2 + $0x388] sm:$0xff]  ;;  %v3730_v45 = vpack.c.bf16 %v35_v19, %v34_v14  ;;  %v3735_v49 = vpack.c.bf16 %v67_v28, %v66_v22  ;;  %v84_v54 = vld [vmem:[%s4435_s2 + $0x200] sm:$0xff]  ;;  %v134_v19 = vld [vmem:[%s4435_s2 + $0x390] sm:$0xff] }
  0x1a   :  { %2770 = vmatprep.subr.bf16.mxu0 %v3655_v44  ;;  %4514 = vst [vmem:[#allocation9_spill] sm:$0xff] %v3709_v27  ;;  %v171_v47 = vrot.slane %v157_v32, %v3583_v2  ;;  %v3737_v50 = vpack.c.bf16 %v101_v31, %v100_v30  ;;  %v85_v55 = vld [vmem:[%s4435_s2 + $0x208] sm:$0xff]  ;;  %v554_v59 = vsel %vm542_vm0, %v531_v0, 0.0  ;;  %v3747_v63 = vpack.c.bf16 %v133_v38, %v132_v35  ;;  %v116_v1 = vld [vmem:[%s4435_s2 + $0x300] sm:$0xff]  ;;  %v103_v0 = vld [vmem:[%s4435_s2 + $0x298] sm:$0xff] }
  0x1b   :  { %2800 = vmatpush3.bf16.msra.mxu1 %v3653_v43  ;;  %v549_v33 = vadd.f32 %v548_v4, %v547_v11  ;;  %4515 = vst [vmem:[#allocation10_spill] sm:$0xff] %v3730_v45  ;;  %4516 = vst [vmem:[#allocation11_spill] sm:$0xff] %v3735_v49  ;;  %263 = vmatprep.mubr.f32.mxu0 %v172_v34  ;;  %v117_v4 = vld [vmem:[%s4435_s2 + $0x308] sm:$0xff]  ;;  %v102_v11 = vld [vmem:[%s4435_s2 + $0x290] sm:$0xff]  ;;  %v3769_v28 = vpack.c.bf16 %v85_v55, %v84_v54 }
  0x1c   :  { %2802 = vmatprep.subr.bf16.mxu1 %v3666_v52  ;;  %4517 = vst [vmem:[#allocation12_spill] sm:$0xff] %v3737_v50  ;;  %v173_v61 = vcombine.high %v171_v47, %v171_v47  ;;  %4518 = vst [vmem:[#allocation13_spill] sm:$0xff] %v3747_v63  ;;  %v135_v22 = vld [vmem:[%s4435_s2 + $0x398] sm:$0xff]  ;;  %v3773_v31 = vpack.c.bf16 %v117_v4, %v116_v1  ;;  %v86_v32 = vld [vmem:[%s4435_s2 + $0x210] sm:$0xff]  ;;  %v3785_v35 = vpack.c.bf16 %v103_v0, %v102_v11 }
  0x1d   :  { %2772 = vmatpush3.bf16.msra.mxu0 %v3679_v60  ;;  %v551_v48 = vadd.f32 %v550_v24, %v549_v33  ;;  %v556_v24 = vsel %vm542_vm0, %v533_v39, 0.0  ;;  %v87_v33 = vld [vmem:[%s4435_s2 + $0x218] sm:$0xff]  ;;  %v118_v34 = vld [vmem:[%s4435_s2 + $0x310] sm:$0xff]  ;;  %v3787_v38 = vpack.c.bf16 %v135_v22, %v134_v19  ;;  %v136_v55 = vld [vmem:[%s4435_s2 + $0x3a0] sm:$0xff] }
  0x1e   :  { %2774 = vmatprep.subr.bf16.mxu0 %v3694_v13  ;;  %333 = vmatprep.mubr.f32.mxu1 %v173_v61  ;;  %v119_v39 = vld [vmem:[%s4435_s2 + $0x318] sm:$0xff]  ;;  %v3805_v61 = vpack.c.bf16 %v87_v33, %v86_v32  ;;  %v89_v11 = vld [vmem:[%s4435_s2 + $0x228] sm:$0xff]  ;;  %v106_v19 = vld [vmem:[%s4435_s2 + $0x2b0] sm:$0xff] }
  0x1f   :  { %2804 = vmatpush3.bf16.msra.mxu1 %v3690_v10  ;;  %v553_v14 = vadd.f32 %v552_v40, %v551_v48  ;;  %v104_v40 = vld [vmem:[%s4435_s2 + $0x2a0] sm:$0xff]  ;;  %v105_v48 = vld [vmem:[%s4435_s2 + $0x2a8] sm:$0xff]  ;;  %v3808_v1 = vpack.c.bf16 %v119_v39, %v118_v34  ;;  %v107_v22 = vld [vmem:[%s4435_s2 + $0x2b8] sm:$0xff] }
  0x20   :  { %2806 = vmatprep.subr.bf16.mxu1 %v3709_v27  ;;  %4519 = vst [vmem:[#allocation14_spill] sm:$0xff] %v3805_v61  ;;  %v3810_v4 = vpack.c.bf16 %v105_v48, %v104_v40  ;;  %v121_v0 = vld [vmem:[%s4435_s2 + $0x328] sm:$0xff]  ;;  %v3847_v34 = vpack.c.bf16 %v107_v22, %v106_v19  ;;  %v90_v39 = vld [vmem:[%s4435_s2 + $0x230] sm:$0xff]  ;;  %v91_v40 = vld [vmem:[%s4435_s2 + $0x238] sm:$0xff] }
  0x21   :  { %2776 = vmatpush3.bf16.msra.mxu0 %v3730_v45  ;;  %v555_v30 = vadd.f32 %v554_v59, %v553_v14  ;;  %v137_v59 = vld [vmem:[%s4435_s2 + $0x3a8] sm:$0xff]  ;;  %4520 = vst [vmem:[#allocation15_spill] sm:$0xff] %v3808_v1  ;;  %v122_v48 = vld [vmem:[%s4435_s2 + $0x330] sm:$0xff]  ;;  %v3882_v19 = vpack.c.bf16 %v91_v40, %v90_v39 }
  0x22   :  { %2810 = vmatprep.subr.bf16.mxu0 %v3737_v50  ;;  %4521 = vst [vmem:[#allocation16_spill] sm:$0xff] %v3810_v4  ;;  %v3823_v14 = vpack.c.bf16 %v137_v59, %v136_v55  ;;  %4525 = vst [vmem:[#allocation20_spill] sm:$0xff] %v3847_v34  ;;  %v123_v55 = vld [vmem:[%s4435_s2 + $0x338] sm:$0xff]  ;;  %v108_v59 = vld [vmem:[%s4435_s2 + $0x2c0] sm:$0xff] }
  0x23   :  { %2808 = vmatpush3.bf16.msra.mxu1 %v3735_v49  ;;  %v557_v54 = vadd.f32 %v556_v24, %v555_v30  ;;  %v138_v24 = vld [vmem:[%s4435_s2 + $0x3b0] sm:$0xff]  ;;  %v139_v30 = vld [vmem:[%s4435_s2 + $0x3b8] sm:$0xff]  ;;  %4528 = vst [vmem:[#allocation23_spill] sm:$0xff] %v3882_v19 }
  0x24   :  { %2842 = vmatprep.subr.bf16.mxu1 %v3747_v63  ;;  %264 = vmatmul.mubr.f32.vlgmr.msra.gmra.mrb[0].mxu0 %v164_v23  ;;  %v88_v23 = vld [vmem:[%s4435_s2 + $0x220] sm:$0xff]  ;;  %4522 = vst [vmem:[#allocation17_spill] sm:$0xff] %v3823_v14 }
  0x25   :  { %2812 = vmatpush3.bf16.msra.mxu0 %v3769_v28  ;;  %558 = vadd.xlane.f32.xlu0 %v557_v54  ;;  %v3841_v32 = vpack.c.bf16 %v89_v11, %v88_v23  ;;  %v3859_v54 = vpack.c.bf16 %v139_v30, %v138_v24  ;;  %v109_v23 = vld [vmem:[%s4435_s2 + $0x2c8] sm:$0xff]  ;;  %v140_v11 = vld [vmem:[%s4435_s2 + $0x3c0] sm:$0xff] }
  0x26   :  { %334 = vmatmul.mubr.f32.vlgmr.msra.gmra.mrb[0].mxu1 %v171_v47  ;;  %v120_v47 = vld [vmem:[%s4435_s2 + $0x320] sm:$0xff]  ;;  %2814 = vmatprep.subr.bf16.mxu0 %v3785_v35 }
  0x27   :  { %2844 = vmatpush3.bf16.msra.mxu1 %v3773_v31  ;;  %4523 = vst [vmem:[#allocation18_spill] sm:$0xff] %v3841_v32  ;;  %v3845_v33 = vpack.c.bf16 %v121_v0, %v120_v47  ;;  %4526 = vst [vmem:[#allocation21_spill] sm:$0xff] %v3859_v54  ;;  %v141_v47 = vld [vmem:[%s4435_s2 + $0x3c8] sm:$0xff] }
  0x28   :  { %2846 = vmatprep.subr.bf16.mxu1 %v3787_v38  ;;  %v3879_v0 = vld [vmem:[%s4433_s0 + $0x8] sm:$0xff] }
  0x29   :  { %2816 = vmatpush3.bf16.msra.mxu0 %v3805_v61  ;;  %4524 = vst [vmem:[#allocation19_spill] sm:$0xff] %v3845_v33  ;;  %4527 = vst [vmem:[#allocation22_spill] sm:$0xff] %v3879_v0  ;;  %v3886_v22 = vrot.slane %v3879_v0, %v3583_v2  ;;  %v174_v24 = vcombine.high %v3879_v0, %v3879_v0 }
  0x2a   :  { %2818 = vmatprep.subr.bf16.mxu0 %v3810_v4 }
  0x2b   :  { %2848 = vmatpush3.bf16.msra.mxu1 %v3808_v1 }
  0x2c   :  { %2850 = vmatprep.subr.bf16.mxu1 %v3823_v14 }
  0x2d   :  { %2820 = vmatpush3.bf16.msra.mxu0 %v3841_v32 }
  0x2e   :  { %9 = vsyncpa [#allocation3], 0  ;;  %2822 = vmatprep.subr.bf16.mxu0 %v3847_v34  ;;  %v3892_v30 = vpack.c.bf16 %v123_v55, %v122_v48  ;;  %v3894_v14 = vpack.c.bf16 %v109_v23, %v108_v59  ;;  %v92_v39 = vld [vmem:[%s4435_s2 + $0x240] sm:$0xff]  ;;  %v93_v40 = vld [vmem:[%s4435_s2 + $0x248] sm:$0xff]  ;;  %v189_v23 = vcombine.high %v3886_v22, %v3886_v22  ;;  %v188_v34 = vrot.slane %v174_v24, %v3583_v2 }
  0x2f   :  { %2852 = vmatpush3.bf16.msra.mxu1 %v3845_v33  ;;  %v124_v32 = vld [vmem:[%s4435_s2 + $0x340] sm:$0xff]  ;;  %v3906_v33 = vpack.c.bf16 %v141_v47, %v140_v11  ;;  %v125_v48 = vld [vmem:[%s4435_s2 + $0x348] sm:$0xff]  ;;  %v110_v55 = vld [vmem:[%s4435_s2 + $0x2d0] sm:$0xff]  ;;  %vm479_vm3 = vcmask 123904   ;;  %vm922_vm4 = vcmask 130048   ;;  %vm2040_vm9 = vcmask 0  }
  0x30   :  { %4529 = vst [vmem:[#allocation24_spill] sm:$0xff] %v3892_v30  ;;  %2854 = vmatprep.subr.bf16.mxu1 %v3859_v54  ;;  %v111_v59 = vld [vmem:[%s4435_s2 + $0x2d8] sm:$0xff]  ;;  %v142_v11 = vld [vmem:[%s4435_s2 + $0x3d0] sm:$0xff]  ;;  %v3927_v54 = vpack.c.bf16 %v93_v40, %v92_v39  ;;  %403 = vmatprep.mubr.f32.mxu0 %v189_v23  ;;  %v190_v1 = vcombine.high %v188_v34, %v188_v34  ;;  %v145_v23 = vld [vmem:[%s4435_s2 + $0x3e8] sm:$0xff] }
  0x31   :  { %4530 = vst [vmem:[#allocation25_spill] sm:$0xff] %v3906_v33  ;;  %v143_v47 = vld [vmem:[%s4435_s2 + $0x3d8] sm:$0xff]  ;;  %2824 = vmatpush3.bf16.msra.mxu0 %v3882_v19  ;;  %v3931_v4 = vpack.c.bf16 %v125_v48, %v124_v32  ;;  %v3933_v24 = vpack.c.bf16 %v111_v59, %v110_v55  ;;  %v94_v61 = vld [vmem:[%s4435_s2 + $0x250] sm:$0xff]  ;;  %v112_v48 = vld [vmem:[%s4435_s2 + $0x2e0] sm:$0xff] }
  0x32   :  { %4531 = vst [vmem:[#allocation26_spill] sm:$0xff] %v3927_v54  ;;  %2826 = vmatprep.subr.bf16.mxu0 %v3894_v14  ;;  %v95_v19 = vld [vmem:[%s4435_s2 + $0x258] sm:$0xff]  ;;  %v126_v39 = vld [vmem:[%s4435_s2 + $0x350] sm:$0xff]  ;;  %v3945_v40 = vpack.c.bf16 %v143_v47, %v142_v11  ;;  %v113_v55 = vld [vmem:[%s4435_s2 + $0x2e8] sm:$0xff]  ;;  %473 = vmatprep.mubr.f32.mxu1 %v190_v1 }
  0x33   :  { %2856 = vmatpush3.bf16.msra.mxu1 %v3892_v30  ;;  %4532 = vst [vmem:[#allocation27_spill] sm:$0xff] %v3931_v4  ;;  %4533 = vst [vmem:[#allocation28_spill] sm:$0xff] %v3933_v24  ;;  %v127_v32 = vld [vmem:[%s4435_s2 + $0x358] sm:$0xff]  ;;  %v144_v59 = vld [vmem:[%s4435_s2 + $0x3e0] sm:$0xff]  ;;  %v3963_v11 = vpack.c.bf16 %v95_v19, %v94_v61 }
  0x34   :  { %2858 = vmatprep.subr.bf16.mxu1 %v3906_v33  ;;  %4534 = vst [vmem:[#allocation29_spill] sm:$0xff] %v3945_v40  ;;  %v3967_v47 = vpack.c.bf16 %v127_v32, %v126_v39  ;;  %v3969_v33 = vpack.c.bf16 %v113_v55, %v112_v48  ;;  %v96_v1 = vld [vmem:[%s4435_s2 + $0x260] sm:$0xff]  ;;  %v97_v30 = vld [vmem:[%s4435_s2 + $0x268] sm:$0xff]  ;;  %v3981_v19 = vpack.c.bf16 %v145_v23, %v144_v59  ;;  %v114_v32 = vld [vmem:[%s4435_s2 + $0x2f0] sm:$0xff] }
  0x35   :  { %2828 = vmatpush3.bf16.msra.mxu0 %v3927_v54  ;;  %4535 = vst [vmem:[#allocation30_spill] sm:$0xff] %v3963_v11  ;;  %v128_v61 = vld [vmem:[%s4435_s2 + $0x360] sm:$0xff]  ;;  %v129_v39 = vld [vmem:[%s4435_s2 + $0x368] sm:$0xff]  ;;  %v115_v48 = vld [vmem:[%s4435_s2 + $0x2f8] sm:$0xff]  ;;  %v3999_v23 = vpack.c.bf16 %v97_v30, %v96_v1 }
  0x36   :  { %2830 = vmatprep.subr.bf16.mxu0 %v3933_v24  ;;  %4536 = vst [vmem:[#allocation31_spill] sm:$0xff] %v3967_v47  ;;  %4537 = vst [vmem:[#allocation32_spill] sm:$0xff] %v3969_v33  ;;  %v146_v55 = vld [vmem:[%s4435_s2 + $0x3f0] sm:$0xff]  ;;  %v147_v59 = vld [vmem:[%s4435_s2 + $0x3f8] sm:$0xff] }
  0x37   :  { %2860 = vmatpush3.bf16.msra.mxu1 %v3931_v4  ;;  %4538 = vst [vmem:[#allocation33_spill] sm:$0xff] %v3981_v19  ;;  %4539 = vst [vmem:[#allocation34_spill] sm:$0xff] %v3999_v23  ;;  %v4005_v4 = vpack.c.bf16 %v115_v48, %v114_v32  ;;  %v98_v24 = vld [vmem:[%s4435_s2 + $0x270] sm:$0xff]  ;;  %v99_v54 = vld [vmem:[%s4435_s2 + $0x278] sm:$0xff]  ;;  %v4014_v30 = vpack.c.bf16 %v147_v59, %v146_v55 }
  0x38   :  { %2862 = vmatprep.subr.bf16.mxu1 %v3945_v40  ;;  %v4003_v40 = vpack.c.bf16 %v129_v39, %v128_v61  ;;  %v130_v1 = vld [vmem:[%s4435_s2 + $0x370] sm:$0xff]  ;;  %v131_v61 = vld [vmem:[%s4435_s2 + $0x378] sm:$0xff]  ;;  %v4023_v39 = vpack.c.bf16 %v99_v54, %v98_v24  ;;  %vm4118_vm5 = vmpackc.low %vm922_vm4, %vm922_vm4 }
  0x39   :  { %2832 = vmatpush3.bf16.msra.mxu0 %v3963_v11  ;;  %4541 = vst [vmem:[#allocation36_spill] sm:$0xff] %v4005_v4  ;;  %4542 = vst [vmem:[#allocation37_spill] sm:$0xff] %v4014_v30  ;;  %v4027_v32 = vpack.c.bf16 %v131_v61, %v130_v1  ;;  %v3374_v1 = vmov 269488144  }
  0x3a   :  { %2834 = vmatprep.subr.bf16.mxu0 %v3969_v33  ;;  %4540 = vst [vmem:[#allocation35_spill] sm:$0xff] %v4003_v40  ;;  %4543 = vst [vmem:[#allocation38_spill] sm:$0xff] %v4023_v39  ;;  %v571_v61 = vunpack.c.l.s4 %v3374_v1  ;;  %v4552_v1 = vld [vmem:[#allocation21_spill] sm:$0xff] }
  0x3b   :  { %2864 = vmatpush3.bf16.msra.mxu1 %v3967_v47  ;;  %4544 = vst [vmem:[#allocation39_spill] sm:$0xff] %v4027_v32 }
  0x3c   :  { %2866 = vmatprep.subr.bf16.mxu1 %v3981_v19 }
  0x3d   :  { %2836 = vmatpush3.bf16.msra.mxu0 %v3999_v23 }
  0x3e   :  { %2838 = vmatprep.subr.bf16.mxu0 %v4005_v4 }
  0x3f   :  { %2868 = vmatpush3.bf16.msra.mxu1 %v4003_v40 }
  0x40   :  { %2870 = vmatprep.subr.bf16.mxu1 %v4014_v30 }
  0x41   :  { %2840 = vmatpush3.bf16.msra.mxu0 %v4023_v39 }
  0x42   :  { %2874 = vmatprep.subr.bf16.mxu0 %v3410_v3 }
  0x43   :  { %2872 = vmatpush3.bf16.msra.mxu1 %v4027_v32 }
  0x44   :  { %2906 = vmatprep.subr.bf16.mxu1 %v3423_v8  ;;  %404 = vmatmul.mubr.f32.vlgmr.msra.gmra.mrb[2].mxu0 %v3886_v22 }
  0x45   :  { %2876 = vmatpush3.bf16.msra.mxu0 %v3421_v7 }
  0x46   :  { %474 = vmatmul.mubr.f32.vlgmr.msra.gmra.mrb[2].mxu1 %v188_v34  ;;  %2878 = vmatprep.subr.bf16.mxu0 %v3448_v16 }
  0x47   :  { %2908 = vmatpush3.bf16.msra.mxu1 %v3435_v12 }
  0x48   :  { %2910 = vmatprep.subr.bf16.mxu1 %v3462_v21 }
  0x49   :  { %2880 = vmatpush3.bf16.msra.mxu0 %v3450_v17 }
  0x4a   :  { %2882 = vmatprep.subr.bf16.mxu0 %v3476_v26 }
  0x4b   :  { %2912 = vmatpush3.bf16.msra.mxu1 %v3474_v25 }
  0x4c   :  { %2914 = vmatprep.subr.bf16.mxu1 %v3500_v37 }
  0x4d   :  { %2884 = vmatpush3.bf16.msra.mxu0 %v3498_v36 }
  0x4e   :  { %2886 = vmatprep.subr.bf16.mxu0 %v3515_v42 }
  0x4f   :  { %2916 = vmatpush3.bf16.msra.mxu1 %v3513_v41 }
  0x50   :  { %2918 = vmatprep.subr.bf16.mxu1 %v3527_v46 }
  0x51   :  { %2888 = vmatpush3.bf16.msra.mxu0 %v3544_v53 }
  0x52   :  { %2890 = vmatprep.subr.bf16.mxu0 %v3559_v58 }
  0x53   :  { %2920 = vmatpush3.bf16.msra.mxu1 %v3557_v57 }
  0x54   :  { %2922 = vmatprep.subr.bf16.mxu1 %v3571_v62 }
  0x55   :  { %2892 = vmatpush3.bf16.msra.mxu0 %v3599_v9 }
  0x56   :  { %2894 = vmatprep.subr.bf16.mxu0 %v3615_v18 }
  0x57   :  { %2924 = vmatpush3.bf16.msra.mxu1 %v3613_v15 }
  0x58   :  { %2926 = vmatprep.subr.bf16.mxu1 %v3621_v20 }
  0x59   :  { %2896 = vmatpush3.bf16.msra.mxu0 %v3633_v29 }
  0x5a   :  { %2898 = vmatprep.subr.bf16.mxu0 %v3655_v44 }
  0x5b   :  { %2928 = vmatpush3.bf16.msra.mxu1 %v3653_v43 }
  0x5c   :  { %2930 = vmatprep.subr.bf16.mxu1 %v3666_v52 }
  0x5d   :  { %2900 = vmatpush3.bf16.msra.mxu0 %v3679_v60 }
  0x5e   :  { %2902 = vmatprep.subr.bf16.mxu0 %v3694_v13 }
  0x5f   :  { %2932 = vmatpush3.bf16.msra.mxu1 %v3690_v10 }
  0x60   :  { %2934 = vmatprep.subr.bf16.mxu1 %v3709_v27 }
  0x61   :  { %2904 = vmatpush3.bf16.msra.mxu0 %v3730_v45  ;;  %v572_v45 = vunpack.c.0.s8 %v571_v61  ;;  %v4553_v61 = vld [vmem:[#allocation23_spill] sm:$0xff] }
  0x62   :  { %2938 = vmatprep.subr.bf16.mxu0 %v3737_v50 }
  0x63   :  { %2936 = vmatpush3.bf16.msra.mxu1 %v3735_v49  ;;  %v575_v49 = vsub.s32 %v572_v45, %v3538_v51  ;;  %v4548_v45 = vld [vmem:[#allocation17_spill] sm:$0xff] }
  0x64   :  { %2970 = vmatprep.subr.bf16.mxu1 %v3747_v63 }
  0xb2   :  { %v559_v34 = vpop.xlane.xlu0 %558 }
  0xb3   :  { %3326 = vrsqrt.f32 %v559_v34  ;;  %vm562_vm1 = vcmp.eq.f32.partialorder %v559_v34, inf  ;;  %v565_v24 = vand.u32 2147483648, %v559_v34  ;;  %vm564_vm2 = vcmp.eq.f32.partialorder %v559_v34, 0.0 }
  0xbd   :  { %v3327_v54 = vpop.eup %3326 }
  0xbe   :  { %v561_v22 = vmul.f32 %v3327_v54, %v559_v34 }
  0xc0   :  { %v563_v48 = vsel %vm562_vm1, %v559_v34, %v561_v22 }
  0xc1   :  { %v566_v55 = vsel %vm564_vm2, %v565_v24, %v563_v48 }
  0xc2   :  { %v567_v59 = vadd.f32 1e-08, %v566_v55 }
  0xc4   :  { %3328 = vrcp.f32 %v567_v59 }
  0xce   :  { %v3329_v27 = vpop.eup %3328 }
  0xcf   :  { %v576_v50 = vrot.slane %v3329_v27, %v575_v49  ;;  %v4549_v49 = vld [vmem:[#allocation18_spill] sm:$0xff] }
  0xd1   :  { %v578_v63 = vmul.f32 %v576_v50, %v3591_v5  ;;  %v579_v13 = vmul.f32 %v576_v50, %v3596_v6  ;;  %v4550_v50 = vld [vmem:[#allocation20_spill] sm:$0xff] }
  0xd3   :  { %v580_v10 = vmul.f32 1e-06, %v578_v63  ;;  %v581_v54 = vmul.f32 1e-06, %v579_v13  ;;  %v4547_v13 = vld [vmem:[#allocation15_spill] sm:$0xff] }
  0xd4   :  { %v4551_v63 = vld [vmem:[#allocation19_spill] sm:$0xff] }
  0xd5   :  { %v582_v60 = vadd.f32 %v580_v10, %v3677_v56  ;;  %v583_v34 = vadd.f32 %v581_v54, %v3879_v0  ;;  %v4546_v10 = vld [vmem:[#allocation16_spill] sm:$0xff] }
  0xd6   :  { %v4554_v54 = vld [vmem:[#allocation24_spill] sm:$0xff] }
  0xd7   :  { %v593_v22 = vrot.slane %v582_v60, %v3583_v2  ;;  %v586_v24 = vcombine.high %v582_v60, %v582_v60  ;;  %v603_v48 = vcombine.high %v583_v34, %v583_v34  ;;  %v610_v55 = vrot.slane %v583_v34, %v3583_v2  ;;  %v4545_v60 = vld [vmem:[#allocation14_spill] sm:$0xff]  ;;  %v4555_v34 = vld [vmem:[#allocation25_spill] sm:$0xff] }
  0xd9   :  { %v601_v59 = vcombine.high %v593_v22, %v593_v22  ;;  %v600_v51 = vrot.slane %v586_v24, %v3583_v2  ;;  %v617_v27 = vrot.slane %v603_v48, %v3583_v2  ;;  %v618_v6 = vcombine.high %v610_v55, %v610_v55  ;;  %v4557_v24 = vld [vmem:[#allocation28_spill] sm:$0xff]  ;;  %v4558_v48 = vld [vmem:[#allocation27_spill] sm:$0xff] }
  0xdb   :  { %692 = vmatprep.mubr.f32.mxu0 %v601_v59  ;;  %v602_v5 = vcombine.high %v600_v51, %v600_v51  ;;  %v619_v56 = vcombine.high %v617_v27, %v617_v27  ;;  %v4559_v59 = vld [vmem:[#allocation29_spill] sm:$0xff] }
  0xdc   :  { %693 = vmatmul.mubr.f32.vlgmr.msra.gmra.mrb[4].mxu0 %v593_v22  ;;  %v4556_v22 = vld [vmem:[#allocation26_spill] sm:$0xff] }
  0xdd   :  { %2940 = vmatpush3.bf16.msra.mxu0 %v3769_v28  ;;  %762 = vmatprep.mubr.f32.mxu1 %v602_v5  ;;  %v4106_v5 = vld [vmem:[%s4436_s3] ss:$0 sm:$0xff] }
  0xde   :  { %832 = vmatprep.mubr.f32.mxu0 %v618_v6  ;;  %763 = vmatmul.mubr.f32.vlgmr.msra.gmra.mrb[4].mxu1 %v600_v51  ;;  %4560 = vst [vmem:[#allocation14_spill] sm:$0xff] %v4106_v5 }
  0xdf   :  { %2972 = vmatpush3.bf16.msra.mxu1 %v3773_v31  ;;  %2942 = vmatprep.subr.bf16.mxu0 %v3785_v35 }
  0xe0   :  { %902 = vmatprep.mubr.f32.mxu1 %v619_v56  ;;  %2974 = vmatprep.subr.bf16.mxu1 %v3787_v38 }
  0xe1   :  { %2944 = vmatpush3.bf16.msra.mxu0 %v4545_v60 }
  0xe2   :  { %2946 = vmatprep.subr.bf16.mxu0 %v4546_v10 }
  0xe3   :  { %2976 = vmatpush3.bf16.msra.mxu1 %v4547_v13 }
  0xe4   :  { %2978 = vmatprep.subr.bf16.mxu1 %v4548_v45 }
  0xe5   :  { %2948 = vmatpush3.bf16.msra.mxu0 %v4549_v49 }
  0xe6   :  { %2950 = vmatprep.subr.bf16.mxu0 %v4550_v50 }
  0xe7   :  { %2980 = vmatpush3.bf16.msra.mxu1 %v4551_v63 }
  0xe8   :  { %2982 = vmatprep.subr.bf16.mxu1 %v4552_v1 }
  0xe9   :  { %2952 = vmatpush3.bf16.msra.mxu0 %v4553_v61 }
  0xea   :  { %2954 = vmatprep.subr.bf16.mxu0 %v3894_v14 }
  0xeb   :  { %2984 = vmatpush3.bf16.msra.mxu1 %v4554_v54 }
  0xec   :  { %2986 = vmatprep.subr.bf16.mxu1 %v4555_v34 }
  0xed   :  { %2956 = vmatpush3.bf16.msra.mxu0 %v4556_v22 }
  0xee   :  { %2958 = vmatprep.subr.bf16.mxu0 %v4557_v24 }
  0xef   :  { %2988 = vmatpush3.bf16.msra.mxu1 %v4558_v48 }
  0xf0   :  { %2990 = vmatprep.subr.bf16.mxu1 %v4559_v59 }
  0xf1   :  { %2960 = vmatpush3.bf16.msra.mxu0 %v3963_v11 }
  0xf2   :  { %2962 = vmatprep.subr.bf16.mxu0 %v3969_v33 }
  0xf3   :  { %2992 = vmatpush3.bf16.msra.mxu1 %v3967_v47 }
  0xf4   :  { %2994 = vmatprep.subr.bf16.mxu1 %v3981_v19 }
  0xf5   :  { %2964 = vmatpush3.bf16.msra.mxu0 %v3999_v23 }
  0xf6   :  { %2966 = vmatprep.subr.bf16.mxu0 %v4005_v4 }
  0xf7   :  { %v2221_v51 = vpop.f32.mrb[0].mxu0  ;;  %2996 = vmatpush3.bf16.msra.mxu1 %v4003_v40 }
  0xf8   :  { %v2222_v6 = vpop.f32.mrb[1].mxu0  ;;  %2998 = vmatprep.subr.bf16.mxu1 %v4014_v30 }
  0xf9   :  { %v2256_v56 = vpop.f32.mrb[0].mxu1  ;;  %v2223_v0 = vadd.f32 %v2222_v6, %v2221_v51  ;;  %2968 = vmatpush3.bf16.msra.mxu0 %v4023_v39 }
  0xfa   :  { %v2257_v2 = vpop.f32.mrb[1].mxu1  ;;  %3003 = vmatprep.subr.msk.bf16.mxu0 %vm4118_vm5, %v3410_v3 }
  0xfb   :  { %v2258_v19 = vadd.f32 %v2257_v2, %v2256_v56  ;;  %v266_v23 = vadd.f32 %v2223_v0, %v4106_v5  ;;  %3000 = vmatpush3.bf16.msra.mxu1 %v4027_v32 }
  0xfc   :  { %833 = vmatmul.mubr.f32.vlgmr.msra.gmra.mrb[6].mxu0 %v610_v55  ;;  %3051 = vmatprep.subr.msk.bf16.mxu1 %vm4118_vm5, %v3423_v8 }
  0xfd   :  { %v336_v4 = vadd.f32 %v2258_v19, %v266_v23 }
  0xfe   :  { %903 = vmatmul.mubr.f32.vlgmr.msra.gmra.mrb[6].mxu1 %v617_v27 }
 0x102   :  { %3006 = vmatpush3.bf16.xpose.msk.msra.mxu0 %vm4118_vm5, %v3421_v7 }
 0x103   :  { %3009 = vmatprep.subr.msk.bf16.mxu0 %vm4118_vm5, %v3448_v16 }
 0x104   :  { %3054 = vmatpush3.bf16.xpose.msk.msra.mxu1 %vm4118_vm5, %v3435_v12 }
 0x105   :  { %3057 = vmatprep.subr.msk.bf16.mxu1 %vm4118_vm5, %v3462_v21 }
 0x10a   :  { %3012 = vmatpush3.bf16.xpose.msk.msra.mxu0 %vm4118_vm5, %v3450_v17 }
 0x10b   :  { %3015 = vmatprep.subr.msk.bf16.mxu0 %vm4118_vm5, %v3476_v26 }
 0x10c   :  { %3060 = vmatpush3.bf16.xpose.msk.msra.mxu1 %vm4118_vm5, %v3474_v25 }
 0x10d   :  { %3063 = vmatprep.subr.msk.bf16.mxu1 %vm4118_vm5, %v3500_v37 }
 0x112   :  { %3018 = vmatpush3.bf16.xpose.msk.msra.mxu0 %vm4118_vm5, %v3498_v36 }
 0x113   :  { %3021 = vmatprep.subr.msk.bf16.mxu0 %vm4118_vm5, %v3515_v42 }
 0x114   :  { %3066 = vmatpush3.bf16.xpose.msk.msra.mxu1 %vm4118_vm5, %v3513_v41 }
 0x115   :  { %3069 = vmatprep.subr.msk.bf16.mxu1 %vm4118_vm5, %v3527_v46 }
 0x117   :  { %v2291_v40 = vpop.f32.mrb[2].mxu0 }
 0x118   :  { %v2292_v33 = vpop.f32.mrb[3].mxu0 }
 0x119   :  { %v2326_v47 = vpop.f32.mrb[2].mxu1  ;;  %v2293_v11 = vadd.f32 %v2292_v33, %v2291_v40 }
 0x11a   :  { %v2327_v59 = vpop.f32.mrb[3].mxu1  ;;  %3024 = vmatpush3.bf16.xpose.msk.msra.mxu0 %vm4118_vm5, %v3544_v53 }
 0x11b   :  { %v2328_v24 = vadd.f32 %v2327_v59, %v2326_v47  ;;  %v406_v48 = vadd.f32 %v2293_v11, %v336_v4  ;;  %3027 = vmatprep.subr.msk.bf16.mxu0 %vm4118_vm5, %v3559_v58 }
 0x11c   :  { %3072 = vmatpush3.bf16.xpose.msk.msra.mxu1 %vm4118_vm5, %v3557_v57 }
 0x11d   :  { %v476_v51 = vadd.f32 %v2328_v24, %v406_v48  ;;  %3075 = vmatprep.subr.msk.bf16.mxu1 %vm4118_vm5, %v3571_v62 }
 0x11f   :  { %v480_v6 = vsel %vm479_vm3, %v476_v51, -inf }
 0x120   :  { %481 = vmax.xlane.f32.xlu0 %v480_v6 }
 0x122   :  { %3030 = vmatpush3.bf16.xpose.msk.msra.mxu0 %vm4118_vm5, %v3599_v9 }
 0x123   :  { %3033 = vmatprep.subr.msk.bf16.mxu0 %vm4118_vm5, %v3615_v18 }
 0x124   :  { %3078 = vmatpush3.bf16.xpose.msk.msra.mxu1 %vm4118_vm5, %v3613_v15 }
 0x125   :  { %3081 = vmatprep.subr.msk.bf16.mxu1 %vm4118_vm5, %v3621_v20 }
 0x12a   :  { %3036 = vmatpush3.bf16.xpose.msk.msra.mxu0 %vm4118_vm5, %v3633_v29 }
 0x12b   :  { %3039 = vmatprep.subr.msk.bf16.mxu0 %vm4118_vm5, %v3655_v44 }
 0x12c   :  { %3084 = vmatpush3.bf16.xpose.msk.msra.mxu1 %vm4118_vm5, %v3653_v43 }
 0x12d   :  { %3087 = vmatprep.subr.msk.bf16.mxu1 %vm4118_vm5, %v3666_v52 }
 0x1ad   :  { %v482_v27 = vpop.xlane.xlu0 %481 }
 0x1ae   :  { %v483_v30 = vsub.f32 %v476_v51, %v482_v27  ;;  %v4565_v51 = vld [vmem:[#allocation8_spill] sm:$0xff] }
 0x1af   :  { %v2361_v2 = vpop.f32.mrb[4].mxu0  ;;  %v4569_v27 = vld [vmem:[#allocation12_spill] sm:$0xff] }
 0x1b0   :  { %v2362_v56 = vpop.f32.mrb[5].mxu0  ;;  %v484_v33 = vmul.f32 1.442695, %v483_v30 }
 0x1b1   :  { %v2363_v0 = vadd.f32 %v2362_v56, %v2361_v2  ;;  %v2396_v39 = vpop.f32.mrb[4].mxu1 }
 0x1b2   :  { %v2397_v32 = vpop.f32.mrb[5].mxu1  ;;  %3330 = vpow2.f32 %v484_v33  ;;  %v4570_v33 = vld [vmem:[#allocation13_spill] sm:$0xff] }
 0x1b3   :  { %v695_v19 = vadd.f32 %v2363_v0, %v4106_v5  ;;  %v2398_v23 = vadd.f32 %v2397_v32, %v2396_v39  ;;  %v4563_v39 = vld [vmem:[#allocation6_spill] sm:$0xff]  ;;  %v4564_v32 = vld [vmem:[#allocation7_spill] sm:$0xff] }
 0x1b4   :  { %3042 = vmatpush3.bf16.xpose.msk.msra.mxu0 %vm4118_vm5, %v4563_v39  ;;  %3090 = vmatpush3.bf16.xpose.msk.msra.mxu1 %vm4118_vm5, %v4564_v32 }
 0x1b5   :  { %v765_v55 = vadd.f32 %v2398_v23, %v695_v19  ;;  %3045 = vmatprep.subr.msk.bf16.mxu0 %vm4118_vm5, %v4565_v51  ;;  %v4566_v19 = vld [vmem:[#allocation9_spill] sm:$0xff]  ;;  %v4567_v23 = vld [vmem:[#allocation10_spill] sm:$0xff] }
 0x1b6   :  { %3093 = vmatprep.subr.msk.bf16.mxu1 %vm4118_vm5, %v4566_v19 }
 0x1bc   :  { %v3331_v56 = vpop.eup %3330  ;;  %3048 = vmatpush3.bf16.xpose.msk.msra.mxu0 %vm4118_vm5, %v4567_v23 }
 0x1bd   :  { %v486_v0 = vsel %vm479_vm3, %v3331_v56, 0.0  ;;  %3099 = vmatprep.subr.msk.bf16.mxu0 %vm4118_vm5, %v4569_v27 }
 0x1cf   :  { %v2431_v40 = vpop.f32.mrb[6].mxu0 }
 0x1d0   :  { %v2432_v4 = vpop.f32.mrb[7].mxu0 }
 0x1d1   :  { %v2433_v11 = vadd.f32 %v2432_v4, %v2431_v40  ;;  %v2466_v47 = vpop.f32.mrb[6].mxu1 }
 0x1d2   :  { %v2467_v24 = vpop.f32.mrb[7].mxu1 }
 0x1d3   :  { %v835_v48 = vadd.f32 %v2433_v11, %v765_v55  ;;  %v2468_v59 = vadd.f32 %v2467_v24, %v2466_v47  ;;  %v4568_v55 = vld [vmem:[#allocation11_spill] sm:$0xff] }
 0x1d4   :  { %3096 = vmatpush3.bf16.xpose.msk.msra.mxu1 %vm4118_vm5, %v4568_v55 }
 0x1d5   :  { %v905_v6 = vadd.f32 %v2468_v59, %v835_v48  ;;  %3147 = vmatprep.subr.msk.bf16.mxu1 %vm4118_vm5, %v4570_v33 }
 0x1d7   :  { %v908_v2 = vsel %vm479_vm3, %v905_v6, -inf }
 0x1d8   :  { %909 = vmax.xlane.f32.xlu1 %v908_v2 }
 0x1dc   :  { %487 = vadd.xlane.f32.xlu1 %v486_v0 }
 0x265   :  { %v910_v40 = vpop.xlane.xlu1 %909 }
 0x266   :  { %v911_v4 = vsub.f32 %v905_v6, %v910_v40 }
 0x268   :  { %v912_v11 = vmul.f32 1.442695, %v911_v4 }
 0x269   :  { %v488_v47 = vpop.xlane.xlu1 %487 }
 0x26a   :  { %3332 = vpow2.f32 %v912_v11 }
 0x26b   :  { %3334 = vrcp.f32 %v488_v47  ;;  %v4576_v47 = vld [vmem:[#allocation31_spill] sm:$0xff] }
 0x274   :  { %v3333_v24 = vpop.eup %3332 }
 0x275   :  { %v3335_v48 = vpop.eup %3334  ;;  %v914_v59 = vsel %vm479_vm3, %v3333_v24, 0.0 }
 0x276   :  { %v4225_v2 = vmul.f32 %v3335_v48, %v3331_v56  ;;  %915 = vadd.xlane.f32.xlu0 %v914_v59  ;;  %v4573_v56 = vld [vmem:[#allocation28_spill] sm:$0xff]  ;;  %v4578_v48 = vld [vmem:[#allocation33_spill] sm:$0xff]  ;;  %v4579_v59 = vld [vmem:[#allocation34_spill] sm:$0xff] }
 0x278   :  { %4571 = vst [vmem:[#allocation16_spill] sm:$0xff] %v4225_v2  ;;  %v491_v0 = vsel %vm479_vm3, %v4225_v2, 0.0 }
 0x279   :  { %492 = vadd.xlane.f32.xlu1 %v491_v0  ;;  %v4580_v0 = vld [vmem:[#allocation35_spill] sm:$0xff] }
 0x303   :  { %v916_v5 = vpop.xlane.xlu0 %915 }
 0x304   :  { %3336 = vrcp.f32 %v916_v5  ;;  %v4572_v5 = vld [vmem:[#allocation27_spill] sm:$0xff] }
 0x306   :  { %v493_v6 = vpop.xlane.xlu1 %492 }
 0x30e   :  { %v3337_v33 = vpop.eup %3336 }
 0x30f   :  { %v918_v27 = vmul.f32 %v3337_v33, %v3333_v24  ;;  %v4575_v33 = vld [vmem:[#allocation30_spill] sm:$0xff]  ;;  %v4577_v24 = vld [vmem:[#allocation32_spill] sm:$0xff] }
 0x311   :  { %v919_v40 = vmul.f32 %v918_v27, %v493_v6  ;;  %v4574_v27 = vld [vmem:[#allocation29_spill] sm:$0xff]  ;;  %v4581_v6 = vld [vmem:[#allocation36_spill] sm:$0xff] }
 0x313   :  { %v920_v4 = vsub.f32 %v919_v40, %v4225_v2  ;;  %v4582_v40 = vld [vmem:[#allocation37_spill] sm:$0xff]  ;;  %v4584_v2 = vld [vmem:[#allocation39_spill] sm:$0xff] }
 0x315   :  { %v921_v11 = vmul.f32 5e-07, %v920_v4  ;;  %v4583_v4 = vld [vmem:[#allocation38_spill] sm:$0xff] }
 0x317   :  { %2501 = vmatprep.mubr.msk.f32.mxu0 %vm922_vm4, %v921_v11  ;;  %2535 = vmatprep.mubr.msk.f32.mxu1 %vm922_vm4, %v921_v11 }
 0x318   :  { %2502 = vmatmul.mubr.msk.f32.vlgmr.msra.gmra.mrb[8].mxu0 %vm922_vm4, %v921_v11  ;;  %2536 = vmatmul.mubr.msk.f32.vlgmr.msra.gmra.mrb[8].mxu1 %vm922_vm4, %v921_v11 }
 0x319   :  { %3102 = vmatpush3.bf16.xpose.msk.msra.mxu0 %vm4118_vm5, %v3769_v28  ;;  %3150 = vmatpush3.bf16.xpose.msk.msra.mxu1 %vm4118_vm5, %v3773_v31 }
 0x31a   :  { %2569 = vmatprep.mubr.msk.f32.mxu0 %vm922_vm4, %v921_v11  ;;  %2603 = vmatprep.mubr.msk.f32.mxu1 %vm922_vm4, %v921_v11 }
 0x31b   :  { %3105 = vmatprep.subr.msk.bf16.mxu0 %vm4118_vm5, %v3785_v35  ;;  %3153 = vmatprep.subr.msk.bf16.mxu1 %vm4118_vm5, %v3787_v38 }
 0x321   :  { %3108 = vmatpush3.bf16.xpose.msk.msra.mxu0 %vm4118_vm5, %v4545_v60  ;;  %3156 = vmatpush3.bf16.xpose.msk.msra.mxu1 %vm4118_vm5, %v4547_v13 }
 0x322   :  { %3111 = vmatprep.subr.msk.bf16.mxu0 %vm4118_vm5, %v4546_v10  ;;  %3159 = vmatprep.subr.msk.bf16.mxu1 %vm4118_vm5, %v4548_v45 }
 0x329   :  { %3114 = vmatpush3.bf16.xpose.msk.msra.mxu0 %vm4118_vm5, %v4549_v49  ;;  %3162 = vmatpush3.bf16.xpose.msk.msra.mxu1 %vm4118_vm5, %v4551_v63 }
 0x32a   :  { %3117 = vmatprep.subr.msk.bf16.mxu0 %vm4118_vm5, %v4550_v50  ;;  %3165 = vmatprep.subr.msk.bf16.mxu1 %vm4118_vm5, %v4552_v1 }
 0x331   :  { %3120 = vmatpush3.bf16.xpose.msk.msra.mxu0 %vm4118_vm5, %v4553_v61  ;;  %3168 = vmatpush3.bf16.xpose.msk.msra.mxu1 %vm4118_vm5, %v4554_v54 }
 0x332   :  { %3123 = vmatprep.subr.msk.bf16.mxu0 %vm4118_vm5, %v3894_v14  ;;  %3171 = vmatprep.subr.msk.bf16.mxu1 %vm4118_vm5, %v4555_v34 }
 0x339   :  { %3126 = vmatpush3.bf16.xpose.msk.msra.mxu0 %vm4118_vm5, %v4556_v22  ;;  %3174 = vmatpush3.bf16.xpose.msk.msra.mxu1 %vm4118_vm5, %v4572_v5 }
 0x33a   :  { %3129 = vmatprep.subr.msk.bf16.mxu0 %vm4118_vm5, %v4573_v56  ;;  %3177 = vmatprep.subr.msk.bf16.mxu1 %vm4118_vm5, %v4574_v27 }
 0x341   :  { %3132 = vmatpush3.bf16.xpose.msk.msra.mxu0 %vm4118_vm5, %v4575_v33  ;;  %3180 = vmatpush3.bf16.xpose.msk.msra.mxu1 %vm4118_vm5, %v4576_v47 }
 0x342   :  { %3135 = vmatprep.subr.msk.bf16.mxu0 %vm4118_vm5, %v4577_v24  ;;  %3183 = vmatprep.subr.msk.bf16.mxu1 %vm4118_vm5, %v4578_v48 }
 0x349   :  { %3138 = vmatpush3.bf16.xpose.msk.msra.mxu0 %vm4118_vm5, %v4579_v59  ;;  %3186 = vmatpush3.bf16.xpose.msk.msra.mxu1 %vm4118_vm5, %v4580_v0 }
 0x34a   :  { %3141 = vmatprep.subr.msk.bf16.mxu0 %vm4118_vm5, %v4581_v6  ;;  %3189 = vmatprep.subr.msk.bf16.mxu1 %vm4118_vm5, %v4582_v40 }
 0x351   :  { %3144 = vmatpush3.bf16.xpose.msk.msra.mxu0 %vm4118_vm5, %v4583_v4  ;;  %3192 = vmatpush3.bf16.xpose.msk.msra.mxu1 %vm4118_vm5, %v4584_v2 }
 0x352   :  { %3194 = vmatprep.subr.bf16.mxu0 %v3410_v3  ;;  %3226 = vmatprep.subr.bf16.mxu1 %v3423_v8  ;;  %v4585_v3 = vld [vmem:[#allocation12_spill] sm:$0xff] }
 0x358   :  { %2570 = vmatmul.mubr.msk.f32.vlgmr.msra.gmra.mrb[10].mxu0 %vm922_vm4, %v921_v11  ;;  %2604 = vmatmul.mubr.msk.f32.vlgmr.msra.gmra.mrb[10].mxu1 %vm922_vm4, %v921_v11 }
 0x359   :  { %3196 = vmatpush3.bf16.msra.mxu0 %v3421_v7  ;;  %3228 = vmatpush3.bf16.msra.mxu1 %v3435_v12  ;;  %v4586_v7 = vld [vmem:[#allocation13_spill] sm:$0xff] }
 0x35a   :  { %3198 = vmatprep.subr.bf16.mxu0 %v3448_v16  ;;  %3230 = vmatprep.subr.bf16.mxu1 %v3462_v21 }
 0x35d   :  { %3200 = vmatpush3.bf16.msra.mxu0 %v3450_v17  ;;  %3232 = vmatpush3.bf16.msra.mxu1 %v3474_v25 }
 0x35e   :  { %3202 = vmatprep.subr.bf16.mxu0 %v3476_v26  ;;  %3234 = vmatprep.subr.bf16.mxu1 %v3500_v37 }
 0x361   :  { %3204 = vmatpush3.bf16.msra.mxu0 %v3498_v36  ;;  %3236 = vmatpush3.bf16.msra.mxu1 %v3513_v41 }
 0x362   :  { %3206 = vmatprep.subr.bf16.mxu0 %v3515_v42  ;;  %3238 = vmatprep.subr.bf16.mxu1 %v3527_v46 }
 0x365   :  { %3208 = vmatpush3.bf16.msra.mxu0 %v3544_v53  ;;  %3240 = vmatpush3.bf16.msra.mxu1 %v3557_v57 }
 0x366   :  { %3210 = vmatprep.subr.bf16.mxu0 %v3559_v58  ;;  %3242 = vmatprep.subr.bf16.mxu1 %v3571_v62 }
 0x369   :  { %3212 = vmatpush3.bf16.msra.mxu0 %v3599_v9  ;;  %3244 = vmatpush3.bf16.msra.mxu1 %v3613_v15 }
 0x36a   :  { %3214 = vmatprep.subr.bf16.mxu0 %v3615_v18  ;;  %3246 = vmatprep.subr.bf16.mxu1 %v3621_v20 }
 0x36d   :  { %3216 = vmatpush3.bf16.msra.mxu0 %v3633_v29  ;;  %3248 = vmatpush3.bf16.msra.mxu1 %v3653_v43 }
 0x36e   :  { %3218 = vmatprep.subr.bf16.mxu0 %v3655_v44  ;;  %3250 = vmatprep.subr.bf16.mxu1 %v3666_v52 }
 0x371   :  { %3220 = vmatpush3.bf16.msra.mxu0 %v4563_v39  ;;  %3252 = vmatpush3.bf16.msra.mxu1 %v4564_v32 }
 0x372   :  { %3222 = vmatprep.subr.bf16.mxu0 %v4565_v51  ;;  %3254 = vmatprep.subr.bf16.mxu1 %v4566_v19 }
 0x375   :  { %3224 = vmatpush3.bf16.msra.mxu0 %v4567_v23  ;;  %3256 = vmatpush3.bf16.msra.mxu1 %v4568_v55 }
 0x376   :  { %3258 = vmatprep.subr.bf16.mxu0 %v4585_v3  ;;  %3290 = vmatprep.subr.bf16.mxu1 %v4586_v7 }
 0x3eb   :  { %v1376_v8 = vpop.f32.mrb[8].mxu0  ;;  %v1447_v12 = vpop.f32.mrb[8].mxu1 }
 0x3ec   :  { %v1594_v16 = vmul.f32 %v1376_v8, %v1376_v8  ;;  %v1378_v17 = vpop.f32.mrb[9].mxu0  ;;  %v1449_v21 = vpop.f32.mrb[9].mxu1  ;;  %v1596_v25 = vmul.f32 %v1447_v12, %v1447_v12 }
 0x3ed   :  { %v1595_v26 = vmul.f32 %v1378_v17, %v1378_v17  ;;  %v1597_v41 = vmul.f32 %v1449_v21, %v1449_v21 }
 0x3ee   :  { %v1602_v36 = vsel %vm542_vm0, %v1594_v16, 0.0  ;;  %v1605_v46 = vsel %vm542_vm0, %v1596_v25, 0.0 }
 0x3ef   :  { %v1603_v37 = vsel %vm542_vm0, %v1595_v26, 0.0  ;;  %v1607_v57 = vsel %vm542_vm0, %v1597_v41, 0.0 }
 0x3f0   :  { %v1604_v42 = vadd.f32 %v1603_v37, %v1602_v36 }
 0x3f2   :  { %v1606_v53 = vadd.f32 %v1605_v46, %v1604_v42 }
 0x3f4   :  { %v1608_v58 = vadd.f32 %v1607_v57, %v1606_v53 }
 0x42b   :  { %v1518_v62 = vpop.f32.mrb[10].mxu0  ;;  %v1589_v9 = vpop.f32.mrb[10].mxu1 }
 0x42c   :  { %v1598_v15 = vmul.f32 %v1518_v62, %v1518_v62  ;;  %v1520_v18 = vpop.f32.mrb[11].mxu0  ;;  %v1591_v20 = vpop.f32.mrb[11].mxu1  ;;  %v1600_v44 = vmul.f32 %v1589_v9, %v1589_v9 }
 0x42d   :  { %v1599_v29 = vmul.f32 %v1520_v18, %v1520_v18  ;;  %v1601_v39 = vmul.f32 %v1591_v20, %v1591_v20 }
 0x42e   :  { %v1609_v43 = vsel %vm542_vm0, %v1598_v15, 0.0  ;;  %v1613_v51 = vsel %vm542_vm0, %v1600_v44, 0.0 }
 0x42f   :  { %v1610_v52 = vadd.f32 %v1609_v43, %v1608_v58  ;;  %v1611_v30 = vsel %vm542_vm0, %v1599_v29, 0.0  ;;  %v1615_v23 = vsel %vm542_vm0, %v1601_v39, 0.0  ;;  %v3348_v39 = vld [vmem:[%s4433_s0] sm:$0xff]  ;;  %s3375_s0 = smov [#allocation2]  }
 0x430   :  { %s2048_s14 = sshll.u32 %s3375_s0, 4  ;;  %s2049_s14 = int_to_ptr.vmem [resolvable:$true] %s2048_s14 }
 0x431   :  { %v1612_v32 = vadd.f32 %v1611_v30, %v1610_v52  ;;  %s3349_s15 = scalar_lea.vmem %s2049_s14, 16  ;;  %s3353_s16 = scalar_lea.vmem %s2049_s14, 32 }
 0x432   :  { %p3350_p0 = scmp.ne.s32.totalorder %s2049_s14, %s3349_s15  ;;  %p3354_p1 = scmp.lt.s32.totalorder %s2049_s14, %s2049_s14 }
 0x433   :  { %v1614_v19 = vadd.f32 %v1613_v51, %v1612_v32  ;;  %v1636_v32 = vmul.f32 2.0, %v3348_v39  ;;  %v4587_v51 = vld [vmem:[#allocation5_spill] sm:$0xff]  ;;  %p3355_p2 = scmp.lt.s32.totalorder %s3353_s16, %s3349_s15 }
 0x435   :  { %v1616_v55 = vadd.f32 %v1615_v23, %v1614_v19  ;;  %p3356_p3 = por %p3355_p2, %p3354_p1 }
 0x437   :  { %1617 = vadd.xlane.f32.xlu0 %v1616_v55  ;;  %p3357_p4 = pnand %p3356_p3, %p3350_p0 }
 0x4c4   :  { %v1618_v11 = vpop.xlane.xlu0 %1617 }
 0x4c5   :  { %3338 = vrsqrt.f32 %v1618_v11  ;;  %vm1621_vm6 = vcmp.eq.f32.partialorder %v1618_v11, inf  ;;  %v1624_v16 = vand.u32 2147483648, %v1618_v11  ;;  %vm1623_vm7 = vcmp.eq.f32.partialorder %v1618_v11, 0.0 }
 0x4cf   :  { %v3339_v3 = vpop.eup %3338 }
 0x4d0   :  { %v1620_v7 = vmul.f32 %v3339_v3, %v1618_v11 }
 0x4d2   :  { %v1622_v25 = vsel %vm1621_vm6, %v1618_v11, %v1620_v7 }
 0x4d3   :  { %v1625_v26 = vsel %vm1623_vm7, %v1624_v16, %v1622_v25 }
 0x4d4   :  { %v1626_v36 = vadd.f32 1e-08, %v1625_v26 }
 0x4d6   :  { %3340 = vrcp.f32 %v1626_v36 }
 0x4e0   :  { %v3341_v37 = vpop.eup %3340 }
 0x4e1   :  { %v1628_v41 = vmul.f32 %v3341_v37, %v1376_v8  ;;  %v1629_v42 = vmul.f32 %v3341_v37, %v1378_v17  ;;  %v1630_v46 = vmul.f32 %v3341_v37, %v1447_v12  ;;  %v1631_v53 = vmul.f32 %v3341_v37, %v1449_v21  ;;  %v4588_v17 = vld [vmem:[#allocation22_spill] sm:$0xff] }
 0x4e2   :  { %v1632_v57 = vmul.f32 %v3341_v37, %v1518_v62  ;;  %v1633_v58 = vmul.f32 %v3341_v37, %v1520_v18  ;;  %v1634_v15 = vmul.f32 %v3341_v37, %v1589_v9  ;;  %v1635_v29 = vmul.f32 %v3341_v37, %v1591_v20 }
 0x4e3   :  { %v1646_v43 = vcombine.low %v1628_v41, %v1629_v42  ;;  %v1647_v44 = vcombine.low %v1630_v46, %v1631_v53  ;;  %v1637_v12 = vmul.f32 2.0, %v4588_v17 }
 0x4e4   :  { %v1663_v52 = vcombine.low %v1632_v57, %v1633_v58  ;;  %v1664_v30 = vcombine.low %v1634_v15, %v1635_v29 }
 0x4e5   :  { %v1654_v19 = vrot.slane %v1646_v43, %v4587_v51  ;;  %v1661_v8 = vrot.slane %v1647_v44, %v4587_v51 }
 0x4e6   :  { %v1671_v21 = vrot.slane %v1663_v52, %v4587_v51  ;;  %v1678_v62 = vrot.slane %v1664_v30, %v4587_v51 }
 0x4e7   :  { %v1662_v9 = vcombine.low %v1654_v19, %v1661_v8 }
 0x4e8   :  { %v1679_v18 = vcombine.low %v1671_v21, %v1678_v62 }
 0x4e9   :  { %v1682_v20 = vadd.f32 %v1662_v9, %v1636_v32 }
 0x4ea   :  { %v1683_v23 = vadd.f32 %v1679_v18, %v1637_v12 }
 0x4eb   :  { %v1693_v55 = vrot.slane %v1682_v20, %v4587_v51  ;;  %v1686_v11 = vcombine.high %v1682_v20, %v1682_v20 }
 0x4ec   :  { %v1710_v3 = vrot.slane %v1683_v23, %v4587_v51  ;;  %v1703_v7 = vcombine.high %v1683_v23, %v1683_v23 }
 0x4ed   :  { %v1701_v16 = vcombine.high %v1693_v55, %v1693_v55  ;;  %v1700_v25 = vrot.slane %v1686_v11, %v4587_v51 }
 0x4ee   :  { %v1717_v26 = vrot.slane %v1703_v7, %v4587_v51  ;;  %v1718_v37 = vcombine.high %v1710_v3, %v1710_v3 }
 0x4ef   :  { %1792 = vmatprep.mubr.f32.mxu0 %v1701_v16  ;;  %v1702_v36 = vcombine.high %v1700_v25, %v1700_v25 }
 0x4f0   :  { %1793 = vmatmul.mubr.f32.vlgmr.msra.gmra.mrb[12].mxu0 %v1693_v55  ;;  %v1719_v41 = vcombine.high %v1717_v26, %v1717_v26 }
 0x4f1   :  { %3260 = vmatpush3.bf16.msra.mxu0 %v3769_v28  ;;  %1862 = vmatprep.mubr.f32.mxu1 %v1702_v36 }
 0x4f2   :  { %1932 = vmatprep.mubr.f32.mxu0 %v1718_v37  ;;  %1863 = vmatmul.mubr.f32.vlgmr.msra.gmra.mrb[12].mxu1 %v1700_v25 }
 0x4f3   :  { %3292 = vmatpush3.bf16.msra.mxu1 %v3773_v31  ;;  %3262 = vmatprep.subr.bf16.mxu0 %v3785_v35 }
 0x4f4   :  { %2002 = vmatprep.mubr.f32.mxu1 %v1719_v41  ;;  %3294 = vmatprep.subr.bf16.mxu1 %v3787_v38 }
 0x4f5   :  { %3264 = vmatpush3.bf16.msra.mxu0 %v4545_v60  ;;  %v4589_v60 = vld [vmem:[#allocation14_spill] sm:$0xff] }
 0x4f6   :  { %3266 = vmatprep.subr.bf16.mxu0 %v4546_v10 }
 0x4f7   :  { %3296 = vmatpush3.bf16.msra.mxu1 %v4547_v13 }
 0x4f8   :  { %3298 = vmatprep.subr.bf16.mxu1 %v4548_v45 }
 0x4f9   :  { %3268 = vmatpush3.bf16.msra.mxu0 %v4549_v49 }
 0x4fa   :  { %3270 = vmatprep.subr.bf16.mxu0 %v4550_v50 }
 0x4fb   :  { %3300 = vmatpush3.bf16.msra.mxu1 %v4551_v63 }
 0x4fc   :  { %3302 = vmatprep.subr.bf16.mxu1 %v4552_v1 }
 0x4fd   :  { %3272 = vmatpush3.bf16.msra.mxu0 %v4553_v61 }
 0x4fe   :  { %3274 = vmatprep.subr.bf16.mxu0 %v3894_v14 }
 0x4ff   :  { %3304 = vmatpush3.bf16.msra.mxu1 %v4554_v54 }
 0x500   :  { %3306 = vmatprep.subr.bf16.mxu1 %v4555_v34 }
 0x501   :  { %3276 = vmatpush3.bf16.msra.mxu0 %v4556_v22 }
 0x502   :  { %3278 = vmatprep.subr.bf16.mxu0 %v4573_v56 }
 0x503   :  { %3308 = vmatpush3.bf16.msra.mxu1 %v4572_v5 }
 0x504   :  { %3310 = vmatprep.subr.bf16.mxu1 %v4574_v27 }
 0x505   :  { %3280 = vmatpush3.bf16.msra.mxu0 %v4575_v33 }
 0x506   :  { %3282 = vmatprep.subr.bf16.mxu0 %v4577_v24  ;;  %v4590_v24 = vld [vmem:[#allocation16_spill] sm:$0xff] }
 0x507   :  { %3312 = vmatpush3.bf16.msra.mxu1 %v4576_v47  ;;  %vm2020_vm8 = vcmp.gt.f32.partialorder %v4590_v24, 0.0 }
 0x508   :  { %3314 = vmatprep.subr.bf16.mxu1 %v4578_v48  ;;  %v2021_v48 = vmax.f32 %v4590_v24, 1e-30 }
 0x509   :  { %3284 = vmatpush3.bf16.msra.mxu0 %v4579_v59 }
 0x50a   :  { %3286 = vmatprep.subr.bf16.mxu0 %v4581_v6 }
 0x50b   :  { %3316 = vmatpush3.bf16.msra.mxu1 %v4580_v0 }
 0x50c   :  { %3318 = vmatprep.subr.bf16.mxu1 %v4582_v40 }
 0x50d   :  { %3288 = vmatpush3.bf16.msra.mxu0 %v4583_v4 }
 0x50f   :  { %3320 = vmatpush3.bf16.msra.mxu1 %v4584_v2 }
 0x510   :  { %1933 = vmatmul.mubr.f32.vlgmr.msra.gmra.mrb[14].mxu0 %v1710_v3 }
 0x512   :  { %2003 = vmatmul.mubr.f32.vlgmr.msra.gmra.mrb[14].mxu1 %v1717_v26 }
 0x5c3   :  { %v2637_v28 = vpop.f32.mrb[12].mxu0 }
 0x5c4   :  { %v2638_v31 = vpop.f32.mrb[13].mxu0 }
 0x5c5   :  { %v2639_v35 = vadd.f32 %v2638_v31, %v2637_v28  ;;  %v2672_v38 = vpop.f32.mrb[12].mxu1 }
 0x5c6   :  { %v2673_v14 = vpop.f32.mrb[13].mxu1 }
 0x5c7   :  { %v1795_v10 = vadd.f32 %v2639_v35, %v4589_v60  ;;  %v2674_v13 = vadd.f32 %v2673_v14, %v2672_v38 }
 0x5c9   :  { %v1865_v45 = vadd.f32 %v2674_v13, %v1795_v10 }
 0x5e3   :  { %v2707_v49 = vpop.f32.mrb[14].mxu0 }
 0x5e4   :  { %v2708_v50 = vpop.f32.mrb[15].mxu0 }
 0x5e5   :  { %v2709_v63 = vadd.f32 %v2708_v50, %v2707_v49  ;;  %v2742_v1 = vpop.f32.mrb[14].mxu1 }
 0x5e6   :  { %v2743_v61 = vpop.f32.mrb[15].mxu1 }
 0x5e7   :  { %v1935_v54 = vadd.f32 %v2709_v63, %v1865_v45  ;;  %v2744_v34 = vadd.f32 %v2743_v61, %v2742_v1 }
 0x5e9   :  { %v2005_v22 = vadd.f32 %v2744_v34, %v1935_v54 }
 0x5eb   :  { %v2008_v2 = vsel %vm479_vm3, %v2005_v22, -inf }
 0x5ec   :  { %2009 = vmax.xlane.f32.xlu1 %v2008_v2 }
 0x679   :  { %v2010_v5 = vpop.xlane.xlu1 %2009 }
 0x67a   :  { %v2011_v56 = vsub.f32 %v2005_v22, %v2010_v5 }
 0x67c   :  { %v2012_v27 = vmul.f32 1.442695, %v2011_v56 }
 0x67e   :  { %3342 = vpow2.f32 %v2012_v27 }
 0x67f   :  { %3344 = vlog2.f32 %v2021_v48 }
 0x688   :  { %v3343_v33 = vpop.eup %3342 }
 0x689   :  { %v2014_v47 = vsel %vm479_vm3, %v3343_v33, 0.0  ;;  %v3345_v0 = vpop.eup %3344 }
 0x68a   :  { %2015 = vadd.xlane.f32.xlu0 %v2014_v47  ;;  %v2023_v6 = vmul.f32 0.6931472, %v3345_v0 }
 0x68c   :  { %v2024_v42 = vmul.f32 %v2023_v6, %v4590_v24 }
 0x68e   :  { %v2025_v57 = vsel %vm2020_vm8, %v2024_v42, 0.0 }
 0x717   :  { %v2016_v59 = vpop.xlane.xlu0 %2015 }
 0x718   :  { %3346 = vlog2.f32 %v2016_v59 }
 0x722   :  { %v3347_v40 = vpop.eup %3346 }
 0x723   :  { %v2018_v4 = vmul.f32 0.6931472, %v3347_v40 }
 0x725   :  { %v2019_v46 = vsub.f32 %v2011_v56, %v2018_v4 }
 0x727   :  { %v2026_v53 = vmul.f32 %v2019_v46, %v4590_v24 }
 0x729   :  { %v2027_v58 = vsub.f32 %v2025_v57, %v2026_v53 }
 0x72b   :  { %v2028_v15 = vsel %vm479_vm3, %v2027_v58, 0.0 }
 0x72c   :  { %2029 = vadd.xlane.f32.xlu1 %v2028_v15 }
 0x7b9   :  { %v2030_v29 = vpop.xlane.xlu1 %2029 }
 0x7ba   :  { %v2031_v43 = vsel %vm542_vm0, %v2030_v29, 0.0 }
 0x7bb   :  { %v2032_v44 = vrot.slane %v2031_v43, 4 }
 0x7bd   :  { %v2033_v52 = vadd.f32 %v2032_v44, %v2031_v43 }
 0x7bf   :  { %v2034_v30 = vrot.slane %v2033_v52, 2 }
 0x7c1   :  { %v2035_v39 = vadd.f32 %v2034_v30, %v2033_v52 }
 0x7c3   :  { %v2036_v32 = vrot.slane %v2035_v39, 1 }
 0x7c5   :  { %v2037_v51 = vadd.f32 %v2036_v32, %v2035_v39 }
 0x7c7   :  { %v2039_v19 = vmul.f32 0.5, %v2037_v51 }
 0x7c9   :  { %2041 = vst.msk [vmem:[#allocation2] sm:$0x1] %vm2040_vm9, %v2039_v19 }
 0x7ca   :  { %3360 = shalt.err (!%p3357_p4)
}
 0x7cb   :  { %s3361_s19 = scalar_lea.hbm %s4437_s4, 16 }
 0x7cc   :  { %p3362_p5 = scmp.ne.s32.totalorder %s4437_s4, %s3361_s19  ;;  %p3365_p6 = scmp.lt.u32.totalorder %s3361_s19, %s4437_s4 }
 0x7ce   :  { %p3367_p7 = pnand %p3365_p6, %p3362_p5 }
 0x7d0   :  { %3370 = shalt.err (!%p3367_p7)
}
 0x7d1   :  { %2051 = dma.vmem_to_hbm [thread:$0]  %s2049_s14, 16, %s4437_s4, [#allocation3]  }
 0x7d2   :  { %3371 = dma.done.wait [#allocation3], 16  }
 0x7d3   :  { %3372 = vsyncadd [#allocation3], 4294967280 }
 0x7d4   :  { %2055 = vsyncpa [#allocation3], 1 }

</bundles_post_ra>
